<compile_context>
chip_gen: v7x
topology: tpu7x:2x2x1
jax: 0.10.0
libtpu: 0.0.40
codegen_flags: <defaults>
</compile_context>

<pallas_src>
import jax
import jax.numpy as jnp
from jax.experimental import pallas as pl
from jax.experimental.pallas import tpu as pltpu

FEATURE_KERNEL = {1: 64, 2: 64, 3: 64, 5: 64}   # kernel_size -> out_channels
K_LIST = tuple(FEATURE_KERNEL.keys())
C = 64                                          # channels per branch
N_SHARED = sum(FEATURE_KERNEL.values())         # 256
N_CAT = 768                                     # 11*64 = 704, padded to 768 (lane dense)
MLP_HIDDEN = 32                                 # mlp_dims = (32,)
MLP_PAD = 128                                   # MLP hidden padded to lane width
N_HEAD = 128                                    # padded head width (lane dense)
BN_EPS = 1e-5


# --------------------------------------------------------------------------
# Kernel
# --------------------------------------------------------------------------
def student_kernel(x_ref, wcat_ref, cbias_ref, mlp_w_ref, mlp_b_ref,
                   head_w_ref, head_b_ref,
                   head_ref, shared_ref):
    tb, L, E = x_ref.shape

    # ---- cnn_extractor: one fused MXU matmul (K=E, N=768) for all 11 taps ----
    x2 = x_ref[...].reshape(tb * L, E)                       # bf16
    y = jnp.dot(x2, wcat_ref[...], preferred_element_type=jnp.float32)
    y = y.reshape(tb, L, N_CAT)                              # f32 [tb, L, 768]

    # Per-branch shift-and-add on the cheap 64-lane product slices, then
    # valid-range global max over time (== torch Conv1d 'valid' + max_pool1d).
    feats = []
    base = 0
    for k in K_LIST:
        T = L - k + 1
        acc = y[:, 0:T, base:base + C]
        for j in range(1, k):
            acc = acc + y[:, j:j + T, base + j * C: base + (j + 1) * C]
        feats.append(jnp.max(acc, axis=1))                   # [tb, 64]
        base += k * C

    # Conv bias added after the max (equivalent: constant over T).
    shared = jnp.concatenate(feats, axis=-1) + cbias_ref[...]   # [tb, 256]
    shared_ref[...] = shared

    # ---- classifier: MLP(256->32) zero-padded to 128 lanes, eval-BN folded,
    #      ReLU (Dropout = identity in eval).  Padded lanes stay exactly 0. ----
    h = jnp.maximum(
        jnp.dot(shared, mlp_w_ref[...], preferred_element_type=jnp.float32)
        + mlp_b_ref[...], 0.0)                               # [tb, 128]

    # ---- Linear(32,2) + classifier1 Linear(2,1), composed + padded to 128 ----
    z = jnp.dot(h, head_w_ref[...],
                preferred_element_type=jnp.float32) + head_b_ref[...]   # [tb, 128]
    # cols 0:2 = logits, col 2 = classifier1 pre-activation (sigmoid applied
    # in-place via an iota/select so the store stays one dense 128-lane slab).
    col = jax.lax.broadcasted_iota(jnp.int32, z.shape, 1)
    head_ref[...] = jnp.where(col == 2, 1.0 / (1.0 + jnp.exp(-z)), z)


# --------------------------------------------------------------------------
# Host-side parameter handling
# --------------------------------------------------------------------------
def init_raw_params(key, emb_dim):
    """Deterministic synthetic parameters in native PyTorch layouts."""
    ks = iter(jax.random.split(key, 20))
    raw = {}
    for k, c in FEATURE_KERNEL.items():
        raw[f"conv{k}_w"] = jax.random.normal(next(ks), (c, emb_dim, k), jnp.float32) * 0.05
        raw[f"conv{k}_b"] = jax.random.normal(next(ks), (c,), jnp.float32) * 0.01
    raw["mlp_w"] = jax.random.normal(next(ks), (MLP_HIDDEN, N_SHARED), jnp.float32) * 0.05
    raw["mlp_b"] = jax.random.normal(next(ks), (MLP_HIDDEN,), jnp.float32) * 0.01
    # BatchNorm1d(hidden) eval-mode params (PyTorch defaults)
    raw["bn_gamma"] = jnp.ones((MLP_HIDDEN,), jnp.float32)
    raw["bn_beta"] = jnp.zeros((MLP_HIDDEN,), jnp.float32)
    raw["bn_mean"] = jnp.zeros((MLP_HIDDEN,), jnp.float32)
    raw["bn_var"] = jnp.ones((MLP_HIDDEN,), jnp.float32)
    raw["cls_w"] = jax.random.normal(next(ks), (2, MLP_HIDDEN), jnp.float32) * 0.05
    raw["cls_b"] = jax.random.normal(next(ks), (2,), jnp.float32) * 0.01
    raw["cls1_w"] = jax.random.normal(next(ks), (1, 2), jnp.float32) * 0.5
    raw["cls1_b"] = jax.random.normal(next(ks), (1,), jnp.float32) * 0.01
    return raw


def pack_params(raw):
    """Fold / transpose / concatenate torch-layout params into kernel slabs.

    NOTE: PyTorch Conv1d weight is [C_out, C_in, k]; every tap j becomes a
    column block of W_cat[E, :] (documented so real checkpoints load correctly).
    Assumes the k3mdfend MLP order Linear -> BatchNorm1d -> ReLU -> Dropout.
    """
    cols, cbias = [], []
    for k in K_LIST:
        w = raw[f"conv{k}_w"]                     # [C, E, k]
        for j in range(k):
            cols.append(w[:, :, j].T)             # [E, C]
        cbias.append(raw[f"conv{k}_b"])
    wcat = jnp.concatenate(cols, axis=1)          # [E, 704]
    wcat = jnp.pad(wcat, ((0, 0), (0, N_CAT - wcat.shape[1])))
    cbias = jnp.concatenate(cbias)[None, :]       # [1, 256]

    # Fold eval-mode BatchNorm into the MLP Linear; zero-pad to 128 lanes.
    inv = raw["bn_gamma"] / jnp.sqrt(raw["bn_var"] + BN_EPS)
    mlp_w32 = raw["mlp_w"].T * inv[None, :]                                   # [256, 32]
    mlp_b32 = ((raw["mlp_b"] - raw["bn_mean"]) * inv + raw["bn_beta"])        # [32]
    mlp_w = jnp.zeros((N_SHARED, MLP_PAD), jnp.float32).at[:, :MLP_HIDDEN].set(mlp_w32)
    mlp_b = jnp.zeros((1, MLP_PAD), jnp.float32).at[0, :MLP_HIDDEN].set(mlp_b32)

    # Compose Linear(32,2) and Linear(2,1) into one padded lane-dense head.
    w2, b2 = raw["cls_w"].T, raw["cls_b"]         # [32, 2], [2]
    w3, b3 = raw["cls1_w"].T, raw["cls1_b"]       # [2, 1], [1]
    head_w = jnp.zeros((MLP_PAD, N_HEAD), jnp.float32)
    head_w = head_w.at[:MLP_HIDDEN, 0:2].set(w2)
    head_w = head_w.at[:MLP_HIDDEN, 2:3].set(w2 @ w3)
    head_b = jnp.zeros((1, N_HEAD), jnp.float32)
    head_b = head_b.at[0, 0:2].set(b2)
    head_b = head_b.at[0, 2].set((b2 @ w3 + b3)[0])

    return dict(wcat=wcat.astype(jnp.bfloat16),   # bf16 matmul operand (f32 accumulate)
                cbias=cbias, mlp_w=mlp_w, mlp_b=mlp_b,
                head_w=head_w, head_b=head_b)


# --------------------------------------------------------------------------
# Wrapper: grid / BlockSpecs / compiler params
# --------------------------------------------------------------------------
def _pick_batch_tile(B, L, E, max_tile=None):
    # Per-row VMEM bytes: x tile double-buffered in bf16 + the fused f32 conv
    # product [L, 768] + double-buffered f32 outputs. Budget conservative so
    # the tile also fits v7x (64 MiB physical / 32 MiB default scoped VMEM).
    per_row = L * (2 * 2 * E + 4 * N_CAT) + 8 * (N_SHARED + N_HEAD)
    budget = 24 * 1024 * 1024
    tb = max(1, budget // per_row)
    if max_tile is not None:
        tb = min(tb, max_tile)
    if tb >= B:
        return B, B                                # single grid step
    tb = min(tb, 512)                              # diminishing returns past ~512 rows
    tb = max(8, (tb // 8) * 8)                     # keep output blocks 8-sublane aligned
    Bp = ((B + tb - 1) // tb) * tb
    return tb, Bp


def _vmem_limit(tb, L, E):
    need = tb * L * (2 * 2 * E + 4 * N_CAT)        # x (2 bufs, bf16) + conv product (f32)
    need += 2 * E * N_CAT                          # W_cat (bf16)
    need += 4 * (N_SHARED * (MLP_PAD + 1) + MLP_PAD * N_HEAD + 2 * N_HEAD + N_SHARED)
    need += 2 * 4 * tb * (N_SHARED + N_HEAD)       # outputs (double-buffered)
    need = int(need * 1.5) + (4 << 20)             # headroom for compiler temporaries
    return min(max(need, 32 << 20), 48 << 20)      # >= default scoped, safe under v7x 64 MiB


def student_forward(bert_feature, packed, *, batch_tile=None):
    B, L, E = bert_feature.shape
    tb, Bp = _pick_batch_tile(B, L, E, max_tile=batch_tile)

    x = bert_feature.astype(jnp.bfloat16)          # halve HBM traffic for the hot input
    if Bp != B:
        x = jnp.pad(x, ((0, Bp - B), (0, 0), (0, 0)))

    flops = (2 * Bp * L * E * N_CAT
             + 2 * Bp * N_SHARED * MLP_PAD
             + 2 * Bp * MLP_PAD * N_HEAD)
    bytes_accessed = (x.size * 2
                      + sum(int(p.size) * p.dtype.itemsize for p in packed.values())
                      + Bp * (N_SHARED + N_HEAD) * 4)
    cost = pl.CostEstimate(flops=int(flops), transcendentals=int(Bp * N_HEAD),
                           bytes_accessed=int(bytes_accessed))

    head, shared = pl.pallas_call(
        student_kernel,
        grid=(Bp // tb,),
        in_specs=[
            pl.BlockSpec((tb, L, E), lambda b: (b, 0, 0)),              # x: batch-tiled
            pl.BlockSpec((E, N_CAT), lambda b: (0, 0)),                 # W_cat (resident)
            pl.BlockSpec((1, N_SHARED), lambda b: (0, 0)),              # conv bias
            pl.BlockSpec((N_SHARED, MLP_PAD), lambda b: (0, 0)),        # MLP W (BN folded, padded)
            pl.BlockSpec((1, MLP_PAD), lambda b: (0, 0)),               # MLP b (BN folded, padded)
            pl.BlockSpec((MLP_PAD, N_HEAD), lambda b: (0, 0)),          # head W (cls+cls1, padded)
            pl.BlockSpec((1, N_HEAD), lambda b: (0, 0)),                # head b
        ],
        out_specs=(
            pl.BlockSpec((tb, N_HEAD), lambda b: (b, 0)),               # logits + sigmoid (dense)
            pl.BlockSpec((tb, N_SHARED), lambda b: (b, 0)),             # shared_feature
        ),
        out_shape=(
            jax.ShapeDtypeStruct((Bp, N_HEAD), jnp.float32),
            jax.ShapeDtypeStruct((Bp, N_SHARED), jnp.float32),
        ),
        compiler_params=pltpu.CompilerParams(
            dimension_semantics=("parallel",),      # shard batch grid across v7x's 2 TCs
            vmem_limit_bytes=_vmem_limit(tb, L, E),
        ),
        cost_estimate=cost,
    )(x, packed["wcat"], packed["cbias"], packed["mlp_w"], packed["mlp_b"],
      packed["head_w"], packed["head_b"])

    # torch: logits = classifier(shared); output = sigmoid(classifier1(logits).squeeze(1))
    logits = head[:B, 0:2]
    output = head[:B, 2]
    return logits, output, shared[:B]


# --------------------------------------------------------------------------
# Pure-JAX reference (mirrors the torch module) for a tolerance check
# --------------------------------------------------------------------------
def student_reference(x, raw):
    feats = []
    for k in K_LIST:
        w, b = raw[f"conv{k}_w"], raw[f"conv{k}_b"]      # [C,E,k], [C]
        T = x.shape[1] - k + 1
        acc = jnp.zeros((x.shape[0], T, w.shape[0]), jnp.float32)
        for j in range(k):
            acc = acc + jnp.einsum("bte,ce->btc", x[:, j:j + T, :], w[:, :, j])
        acc = acc + b[None, None, :]
        feats.append(jnp.max(acc, axis=1))
    shared = jnp.concatenate(feats, axis=-1)
    h = shared @ raw["mlp_w"].T + raw["mlp_b"]
    inv = raw["bn_gamma"] / jnp.sqrt(raw["bn_var"] + BN_EPS)
    h = jnp.maximum((h - raw["bn_mean"]) * inv + raw["bn_beta"], 0.0)
    logits = h @ raw["cls_w"].T + raw["cls_b"]
    out = jax.nn.sigmoid((logits @ raw["cls1_w"].T + raw["cls1_b"])[:, 0])
    return logits, out, shared


if __name__ == "__main__":
    B, L, E = 10, 16, 32     # batch, seq_len, emb_dim (small; exercises grid=2 + padding)
    key = jax.random.PRNGKey(0)
    kx, kp = jax.random.split(key)
    x = jax.random.normal(kx, (B, L, E), jnp.float32)   # stands in for bert(...).last_hidden_state
    raw = init_raw_params(kp, E)
    packed = pack_params(raw)

    logits, output, shared = student_forward(x, packed, batch_tile=8)
    jax.block_until_ready((logits, output, shared))

    assert logits.shape == (B, 2)
    assert output.shape == (B,)
    assert shared.shape == (B, N_SHARED)
    assert bool(jnp.all(jnp.isfinite(logits)))
    assert bool(jnp.all((output >= 0.0) & (output <= 1.0)))

    # Tolerance check vs. pure-JAX reference (bf16 matmul operands -> loose tol).
    ref_logits, ref_out, ref_shared = student_reference(x, raw)
    def _maxerr(a, b):
        return float(jnp.max(jnp.abs(a - b)))
    assert _maxerr(shared, ref_shared) < 5e-2, _maxerr(shared, ref_shared)
    assert _maxerr(logits, ref_logits) < 5e-2, _maxerr(logits, ref_logits)
    assert _maxerr(output, ref_out) < 5e-2, _maxerr(output, ref_out)

    print("KERNEL_OK")
</pallas_src>

<mosaic_0001>
module attributes {stable_mosaic.version = 11 : i64} {
  func.func @student_kernel(%arg0: i32, %arg1: memref<8x16x32xbf16, #tpu.memory_space<vmem>>, %arg2: memref<32x768xbf16, #tpu.memory_space<vmem>>, %arg3: memref<1x256xf32, #tpu.memory_space<vmem>>, %arg4: memref<256x128xf32, #tpu.memory_space<vmem>>, %arg5: memref<1x128xf32, #tpu.memory_space<vmem>>, %arg6: memref<128x128xf32, #tpu.memory_space<vmem>>, %arg7: memref<1x128xf32, #tpu.memory_space<vmem>>, %arg8: memref<8x128xf32, #tpu.memory_space<vmem>>, %arg9: memref<8x256xf32, #tpu.memory_space<vmem>>) attributes {dimension_semantics = [#tpu.dimension_semantics<parallel>], iteration_bounds = array<i64: 2>, scalar_prefetch = 0 : i64, scratch_operands = 0 : i64, tpu.core_type = #tpu.core_type<tc>, window_params = [{transform_indices = @transform_0, window_bounds = array<i64: 8, 16, 32>}, {pipeline_mode = #tpu.pipeline_mode<synchronous>, transform_indices = @transform_1, window_bounds = array<i64: 32, 768>}, {pipeline_mode = #tpu.pipeline_mode<synchronous>, transform_indices = @transform_2, window_bounds = array<i64: 1, 256>}, {pipeline_mode = #tpu.pipeline_mode<synchronous>, transform_indices = @transform_3, window_bounds = array<i64: 256, 128>}, {pipeline_mode = #tpu.pipeline_mode<synchronous>, transform_indices = @transform_4, window_bounds = array<i64: 1, 128>}, {pipeline_mode = #tpu.pipeline_mode<synchronous>, transform_indices = @transform_5, window_bounds = array<i64: 128, 128>}, {pipeline_mode = #tpu.pipeline_mode<synchronous>, transform_indices = @transform_6, window_bounds = array<i64: 1, 128>}, {transform_indices = @transform_7, window_bounds = array<i64: 8, 128>}, {transform_indices = @transform_8, window_bounds = array<i64: 8, 256>}]} {
    %c0 = arith.constant 0 : index
    %c0_0 = arith.constant 0 : index
    %c0_1 = arith.constant 0 : index
    %0 = vector.load %arg1[%c0, %c0_0, %c0_1] : memref<8x16x32xbf16, #tpu.memory_space<vmem>>, vector<8x16x32xbf16>
    %1 = vector.shape_cast %0 : vector<8x16x32xbf16> to vector<128x32xbf16>
    %c0_2 = arith.constant 0 : index
    %c0_3 = arith.constant 0 : index
    %2 = vector.load %arg2[%c0_2, %c0_3] : memref<32x768xbf16, #tpu.memory_space<vmem>>, vector<32x768xbf16>
    %cst = arith.constant dense<0.000000e+00> : vector<128x768xf32>
    %3 = tpu.matmul %1, %2, %cst {dimension_numbers = #tpu.dot_dimension_numbers<[1], [0], [0], [1], [0, 0, 1, 1], [], []>} : vector<128x32xbf16>, vector<32x768xbf16>, vector<128x768xf32> -> vector<128x768xf32>
    %4 = vector.shape_cast %3 : vector<128x768xf32> to vector<8x16x768xf32>
    %5 = vector.extract_strided_slice %4 {offsets = [0, 0, 0], sizes = [8, 16, 64], strides = [1, 1, 1]} : vector<8x16x768xf32> to vector<8x16x64xf32>
    %cst_4 = arith.constant dense<0xFF800000> : vector<8x64xf32>
    %6 = vector.multi_reduction <maximumf>, %5, %cst_4 [1] : vector<8x16x64xf32> to vector<8x64xf32>
    %7 = vector.extract_strided_slice %4 {offsets = [0, 0, 64], sizes = [8, 15, 64], strides = [1, 1, 1]} : vector<8x16x768xf32> to vector<8x15x64xf32>
    %8 = vector.extract_strided_slice %4 {offsets = [0, 1, 128], sizes = [8, 15, 64], strides = [1, 1, 1]} : vector<8x16x768xf32> to vector<8x15x64xf32>
    %9 = arith.addf %7, %8 : vector<8x15x64xf32>
    %cst_5 = arith.constant dense<0xFF800000> : vector<8x64xf32>
    %10 = vector.multi_reduction <maximumf>, %9, %cst_5 [1] : vector<8x15x64xf32> to vector<8x64xf32>
    %11 = vector.extract_strided_slice %4 {offsets = [0, 0, 192], sizes = [8, 14, 64], strides = [1, 1, 1]} : vector<8x16x768xf32> to vector<8x14x64xf32>
    %12 = vector.extract_strided_slice %4 {offsets = [0, 1, 256], sizes = [8, 14, 64], strides = [1, 1, 1]} : vector<8x16x768xf32> to vector<8x14x64xf32>
    %13 = arith.addf %11, %12 : vector<8x14x64xf32>
    %14 = vector.extract_strided_slice %4 {offsets = [0, 2, 320], sizes = [8, 14, 64], strides = [1, 1, 1]} : vector<8x16x768xf32> to vector<8x14x64xf32>
    %15 = arith.addf %13, %14 : vector<8x14x64xf32>
    %cst_6 = arith.constant dense<0xFF800000> : vector<8x64xf32>
    %16 = vector.multi_reduction <maximumf>, %15, %cst_6 [1] : vector<8x14x64xf32> to vector<8x64xf32>
    %17 = vector.extract_strided_slice %4 {offsets = [0, 0, 384], sizes = [8, 12, 64], strides = [1, 1, 1]} : vector<8x16x768xf32> to vector<8x12x64xf32>
    %18 = vector.extract_strided_slice %4 {offsets = [0, 1, 448], sizes = [8, 12, 64], strides = [1, 1, 1]} : vector<8x16x768xf32> to vector<8x12x64xf32>
    %19 = arith.addf %17, %18 : vector<8x12x64xf32>
    %20 = vector.extract_strided_slice %4 {offsets = [0, 2, 512], sizes = [8, 12, 64], strides = [1, 1, 1]} : vector<8x16x768xf32> to vector<8x12x64xf32>
    %21 = arith.addf %19, %20 : vector<8x12x64xf32>
    %22 = vector.extract_strided_slice %4 {offsets = [0, 3, 576], sizes = [8, 12, 64], strides = [1, 1, 1]} : vector<8x16x768xf32> to vector<8x12x64xf32>
    %23 = arith.addf %21, %22 : vector<8x12x64xf32>
    %24 = vector.extract_strided_slice %4 {offsets = [0, 4, 640], sizes = [8, 12, 64], strides = [1, 1, 1]} : vector<8x16x768xf32> to vector<8x12x64xf32>
    %25 = arith.addf %23, %24 : vector<8x12x64xf32>
    %cst_7 = arith.constant dense<0xFF800000> : vector<8x64xf32>
    %26 = vector.multi_reduction <maximumf>, %25, %cst_7 [1] : vector<8x12x64xf32> to vector<8x64xf32>
    %27 = tpu.concatenate %6, %10, %16, %26 in 1 : vector<8x64xf32>, vector<8x64xf32>, vector<8x64xf32>, vector<8x64xf32> -> vector<8x256xf32>
    %c0_8 = arith.constant 0 : index
    %c0_9 = arith.constant 0 : index
    %28 = vector.load %arg3[%c0_8, %c0_9] : memref<1x256xf32, #tpu.memory_space<vmem>>, vector<1x256xf32>
    %29 = vector.broadcast %28 : vector<1x256xf32> to vector<8x256xf32>
    %30 = arith.addf %27, %29 : vector<8x256xf32>
    %c0_10 = arith.constant 0 : index
    %c0_11 = arith.constant 0 : index
    %31 = vector.load %arg9[%c0_10, %c0_11] : memref<8x256xf32, #tpu.memory_space<vmem>>, vector<8x256xf32>
    tpu.vector_store %arg9[%c0_10, %c0_11], %30 {strides = array<i32>} : memref<8x256xf32, #tpu.memory_space<vmem>>, vector<8x256xf32>,
    %c0_12 = arith.constant 0 : index
    %c0_13 = arith.constant 0 : index
    %32 = vector.load %arg4[%c0_12, %c0_13] : memref<256x128xf32, #tpu.memory_space<vmem>>, vector<256x128xf32>
    %cst_14 = arith.constant dense<0.000000e+00> : vector<8x128xf32>
    %33 = tpu.matmul %30, %32, %cst_14 {dimension_numbers = #tpu.dot_dimension_numbers<[1], [0], [0], [1], [0, 0, 1, 1], [], []>} : vector<8x256xf32>, vector<256x128xf32>, vector<8x128xf32> -> vector<8x128xf32>
    %c0_15 = arith.constant 0 : index
    %c0_16 = arith.constant 0 : index
    %34 = vector.load %arg5[%c0_15, %c0_16] : memref<1x128xf32, #tpu.memory_space<vmem>>, vector<1x128xf32>
    %35 = vector.broadcast %34 : vector<1x128xf32> to vector<8x128xf32>
    %36 = arith.addf %33, %35 : vector<8x128xf32>
    %cst_17 = arith.constant 0.000000e+00 : f32
    %37 = vector.broadcast %cst_17 : f32 to vector<8x128xf32>
    %38 = arith.maximumf %36, %37 : vector<8x128xf32>
    %c0_18 = arith.constant 0 : index
    %c0_19 = arith.constant 0 : index
    %39 = vector.load %arg6[%c0_18, %c0_19] : memref<128x128xf32, #tpu.memory_space<vmem>>, vector<128x128xf32>
    %cst_20 = arith.constant dense<0.000000e+00> : vector<8x128xf32>
    %40 = tpu.matmul %38, %39, %cst_20 {dimension_numbers = #tpu.dot_dimension_numbers<[1], [0], [0], [1], [0, 0, 1, 1], [], []>} : vector<8x128xf32>, vector<128x128xf32>, vector<8x128xf32> -> vector<8x128xf32>
    %c0_21 = arith.constant 0 : index
    %c0_22 = arith.constant 0 : index
    %41 = vector.load %arg7[%c0_21, %c0_22] : memref<1x128xf32, #tpu.memory_space<vmem>>, vector<1x128xf32>
    %42 = vector.broadcast %41 : vector<1x128xf32> to vector<8x128xf32>
    %43 = arith.addf %40, %42 : vector<8x128xf32>
    %44 = tpu.iota {dimensions = array<i32: 1>} : vector<8x128xi32>
    %c2_i32 = arith.constant 2 : i32
    %45 = vector.broadcast %c2_i32 : i32 to vector<8x128xi32>
    %46 = arith.cmpi eq, %44, %45 : vector<8x128xi32>
    %cst_23 = arith.constant 0.000000e+00 : f32
    %47 = vector.broadcast %cst_23 : f32 to vector<8x128xf32>
    %48 = arith.subf %47, %43 : vector<8x128xf32>
    %49 = math.exp %48 : vector<8x128xf32>
    %cst_24 = arith.constant 1.000000e+00 : f32
    %50 = vector.broadcast %cst_24 : f32 to vector<8x128xf32>
    %51 = arith.addf %50, %49 : vector<8x128xf32>
    %cst_25 = arith.constant 1.000000e+00 : f32
    %52 = vector.broadcast %cst_25 : f32 to vector<8x128xf32>
    %53 = arith.divf %52, %51 : vector<8x128xf32>
    %54 = arith.select %46, %53, %43 : vector<8x128xi1>, vector<8x128xf32>
    %c0_26 = arith.constant 0 : index
    %c0_27 = arith.constant 0 : index
    %55 = vector.load %arg8[%c0_26, %c0_27] : memref<8x128xf32, #tpu.memory_space<vmem>>, vector<8x128xf32>
    tpu.vector_store %arg8[%c0_26, %c0_27], %54 {strides = array<i32>} : memref<8x128xf32, #tpu.memory_space<vmem>>, vector<8x128xf32>,
    return
  }
  func.func @transform_0(%arg0: i32) -> (i32, i32, i32) {
    %c0_i32 = arith.constant 0 : i32
    %c0_i32_0 = arith.constant 0 : i32
    %c0_i32_1 = arith.constant 0 : i32
    return %arg0, %c0_i32, %c0_i32_0 : i32, i32, i32
  }
  func.func @transform_1(%arg0: i32) -> (i32, i32) {
    %c0_i32 = arith.constant 0 : i32
    %c0_i32_0 = arith.constant 0 : i32
    %c0_i32_1 = arith.constant 0 : i32
    return %c0_i32, %c0_i32_0 : i32, i32
  }
  func.func @transform_2(%arg0: i32) -> (i32, i32) {
    %c0_i32 = arith.constant 0 : i32
    %c0_i32_0 = arith.constant 0 : i32
    %c0_i32_1 = arith.constant 0 : i32
    return %c0_i32, %c0_i32_0 : i32, i32
  }
  func.func @transform_3(%arg0: i32) -> (i32, i32) {
    %c0_i32 = arith.constant 0 : i32
    %c0_i32_0 = arith.constant 0 : i32
    %c0_i32_1 = arith.constant 0 : i32
    return %c0_i32, %c0_i32_0 : i32, i32
  }
  func.func @transform_4(%arg0: i32) -> (i32, i32) {
    %c0_i32 = arith.constant 0 : i32
    %c0_i32_0 = arith.constant 0 : i32
    %c0_i32_1 = arith.constant 0 : i32
    return %c0_i32, %c0_i32_0 : i32, i32
  }
  func.func @transform_5(%arg0: i32) -> (i32, i32) {
    %c0_i32 = arith.constant 0 : i32
    %c0_i32_0 = arith.constant 0 : i32
    %c0_i32_1 = arith.constant 0 : i32
    return %c0_i32, %c0_i32_0 : i32, i32
  }
  func.func @transform_6(%arg0: i32) -> (i32, i32) {
    %c0_i32 = arith.constant 0 : i32
    %c0_i32_0 = arith.constant 0 : i32
    %c0_i32_1 = arith.constant 0 : i32
    return %c0_i32, %c0_i32_0 : i32, i32
  }
  func.func @transform_7(%arg0: i32) -> (i32, i32) {
    %c0_i32 = arith.constant 0 : i32
    %c0_i32_0 = arith.constant 0 : i32
    return %arg0, %c0_i32 : i32, i32
  }
  func.func @transform_8(%arg0: i32) -> (i32, i32) {
    %c0_i32 = arith.constant 0 : i32
    %c0_i32_0 = arith.constant 0 : i32
    return %arg0, %c0_i32 : i32, i32
  }
}

</mosaic_0001>

<bundles_post_ra>
// kernel: tpu_custom_call.1
= control target key start
LH: loop header
LB: loop body
LE: loop exit
PB: predicated region body
PF: predicated region fallthrough
CT: control target
= control target key end

     0   :  { %s4025_s0 = inlined_call_operand.hbm [shape: bf16[16,16,32], index: 0, kind: input, shape index: {}]   ;;  %s4026_s1 = inlined_call_operand.hbm [shape: bf16[32,768], index: 1, kind: input, shape index: {}]   ;;  %s4027_s2 = inlined_call_operand.vmem [shape: f32[1,256], index: 2, kind: input, shape index: {}]   ;;  %s4028_s3 = inlined_call_operand.hbm [shape: f32[256,128], index: 3, kind: input, shape index: {}]   ;;  %s4029_s4 = inlined_call_operand.vmem [shape: f32[1,128], index: 4, kind: input, shape index: {}]   ;;  %s4030_s5 = inlined_call_operand.hbm [shape: f32[128,128], index: 5, kind: input, shape index: {}]   ;;  %s4031_s6 = inlined_call_operand.vmem [shape: f32[1,128], index: 6, kind: input, shape index: {}]   ;;  %s4032_s7 = inlined_call_operand.hbm [shape: f32[16,128], index: 7, kind: output, shape index: {0}]   ;;  %s4033_s8 = inlined_call_operand.hbm [shape: f32[16,256], index: 8, kind: output, shape index: {1}]  }
   0x1   :  { %4107 = sst [smem:[#allocation70_spill]] %s4026_s1 }
   0x2   :  { %14 = vsyncpa [#allocation3], 0 }
   0x3   :  { %16 = vsyncpa [#allocation3 + $0x1], 0 }
   0x4   :  { %17 = vsyncpa [#allocation6], 0 }
   0x5   :  { %18 = vsyncpa [#allocation9], 0 }
   0x6   :  { %19 = vsyncpa [#allocation4], 0 }
   0x7   :  { %21 = vsyncpa [#allocation4 + $0x1], 0 }
   0x8   :  { %22 = vsyncpa [#allocation12], 0 }
   0x9   :  { %24 = vsyncpa [#allocation12 + $0x1], 0  ;;  %s2869_s27 = smov 0   ;;  %s2871_s28 = smov 0  }
   0xa   :  { %s2873_s29 = smov 0   ;;  %s2875_s30 = smov 0  }
   0xb LB: > { %4108 = sst [smem:[#allocation18_spill]] %s2793_s27  ;;  %s2890_s9 = sadd.s32 4294967295, %s2805_s30   ;;  %s2805_s30 = sphi %s2875_s30, %s4265_s30   ;;  %s2801_s29 = sphi %s2873_s29, %s4264_s29   ;;  %s2797_s28 = sphi %s2871_s28, %s4263_s28   ;;  %s2793_s27 = sphi %s2869_s27, %s4262_s27  }
   0xc   : > { %s2242_s10 = sadd.s32 4294967294, %s2805_s30   ;;  %p50_p0 = scmp.ne.s32.totalorder %s2797_s28, %s2793_s27 }
   0xd   : > { %p4034_p1 = scmp.eq.s32.totalorder %s2890_s9, 0  ;;  %p206_p3 = scmp.eq.s32.totalorder %s2242_s10, 1 }
   0xe   : > { %p2243_p5 = scmp.ge.s32.totalorder %s2805_s30, 1  ;;  %p239_p7 = scmp.lt.s32.totalorder %s2805_s30, 3 }
   0xf   : > { %p2899_p4 = por %p4034_p1, %p50_p0  ;;  %p2904_p6 = por %p206_p3, %p50_p0 }
  0x10   : > { %p2909_p8 = pnand %p2243_p5, %p239_p7  ;;  %s2807_s14 = smov [#allocation5]  }
  0x11   : > { %s4109_s11 = scalar_select %p2899_p4, 1, 0 }
  0x12   : > { %s4110_s12 = scalar_select %p2904_p6, 1, 0 }
  0x13   : > { %s4112_s13 = scalar_select %p2909_p8, 1, 0 }
  0x14   : > { %4111 = sst [smem:[#allocation19_spill]] %s4110_s12  ;;  %s251_s15 = sshll.u32 %s2807_s14, 4  ;;  %s2913_s15 = int_to_ptr.vmem [resolvable:$true] %s251_s15 }
  0x15   : > { %p2480_p9 = pneg %p2909_p8  ;;  %s2808_s17 = smov [#allocation7]  }
  0x16   : > { %s267_s18 = sshll.u32 %s2808_s17, 4  ;;  %s4114_s1 = sld [smem:[#allocation70_spill]]  ;;  %s2924_s18 = int_to_ptr.vmem [resolvable:$true] %s267_s18 }
  0x17   : > { %p2920_p11 = pnand %p2480_p9, %p4034_p1 }
  0x19   : > { %p2934_p13 = pneg %p2920_p11 }
  0x1c   : > { %s2585_s21 = scalar_lea.hbm %s4114_s1, 1536 }
  0x1d   : > { %p2586_p12 = scmp.ne.s32.totalorder %s4114_s1, %s2585_s21  ;;  %p2592_p5 = scmp.lt.u32.totalorder %s2585_s21, %s4114_s1 }
  0x1f   : > { %p2588_p0 = pnand %p2934_p13, %p2586_p12 }
  0x21   : > { %p2589_p3 = pneg %p2588_p0 }
  0x23   : > { %p2594_p7 = pnand %p2592_p5, %p2589_p3 }
  0x25   : > { %2597 = shalt.err (!%p2594_p7)
}
  0x26   : > { %s2598_s10 = scalar_lea.vmem %s2913_s15, 1536  ;;  %p2606_p2 = scmp.lt.s32.totalorder %s2913_s15, %s2913_s15 }
  0x27   : > { %p2599_p9 = scmp.ne.s32.totalorder %s2913_s15, %s2598_s10  ;;  %p2607_p6 = scmp.lt.s32.totalorder %s2598_s10, %s2598_s10 }
  0x29   : > { %p2601_p10 = pnand %p2599_p9, %p2934_p13  ;;  %p2608_p12 = por %p2607_p6, %p2606_p2 }
  0x2b   : > { %p2602_p1 = pneg %p2601_p10 }
  0x2d   : > { %p2609_p0 = pnand %p2608_p12, %p2602_p1 }
  0x2f   : > { %2612 = shalt.err (!%p2609_p0)
}
  0x30   : > { %s2809_s14 = smov 384   ;;  %s2810_s17 = smov 24  }
  0x31   : > { %2483 = dma.hbm_to_vmem [thread:$0]  (!%p2920_p11), %s4114_s1, 1536, %s2913_s15, [#allocation6], %s2809_s14, %s2809_s14, %s2810_s17  }
  0x32   : > { %s2613_s23 = scalar_lea.hbm %s4028_s3, 4096 }
  0x33   : > { %p2614_p2 = scmp.ne.s32.totalorder %s4028_s3, %s2613_s23  ;;  %p2620_p10 = scmp.lt.u32.totalorder %s2613_s23, %s4028_s3 }
  0x35   : > { %p2616_p1 = pnand %p2614_p2, %p2934_p13 }
  0x37   : > { %p2617_p6 = pneg %p2616_p1 }
  0x39   : > { %p2622_p3 = pnand %p2620_p10, %p2617_p6 }
  0x3b   : > { %2625 = shalt.err (!%p2622_p3)
}
  0x3c   : > { %s2626_s15 = scalar_lea.vmem %s2924_s18, 4096  ;;  %p2634_p12 = scmp.lt.s32.totalorder %s2924_s18, %s2924_s18 }
  0x3d   : > { %p2627_p5 = scmp.ne.s32.totalorder %s2924_s18, %s2626_s15  ;;  %p2635_p0 = scmp.lt.s32.totalorder %s2626_s15, %s2626_s15 }
  0x3f   : > { %p2629_p7 = pnand %p2627_p5, %p2934_p13  ;;  %p2636_p2 = por %p2635_p0, %p2634_p12 }
  0x41   : > { %p2630_p9 = pneg %p2629_p7 }
  0x43   : > { %p2637_p1 = pnand %p2636_p2, %p2630_p9 }
  0x45   : > { %2640 = shalt.err (!%p2637_p1)
}
  0x46   : > { %s2811_s14 = smov 128   ;;  %s2812_s12 = smov 8  }
  0x47   : > { %2486 = dma.hbm_to_vmem [thread:$0]  (!%p2920_p11), %s4028_s3, 4096, %s2924_s18, [#allocation6], %s2811_s14, %s2811_s14, %s2812_s12  }
  0x48   : > { %s2813_s20 = smov [#allocation8]   ;;  %s2979_s22 = sadd.s32 1, %s2805_s30  }
  0x49   : > { %s283_s21 = sshll.u32 %s2813_s20, 4  ;;  %s2641_s26 = scalar_lea.hbm %s4030_s5, 2048  ;;  %s284_s21 = int_to_ptr.vmem [resolvable:$true] %s283_s21 }
  0x4a   : > { %p2642_p6 = scmp.ne.s32.totalorder %s4030_s5, %s2641_s26  ;;  %p2648_p5 = scmp.lt.u32.totalorder %s2641_s26, %s4030_s5 }
  0x4c   : > { %p2644_p10 = pnand %p2642_p6, %p2934_p13 }
  0x4e   : > { %p2645_p3 = pneg %p2644_p10 }
  0x50   : > { %p2650_p7 = pnand %p2648_p5, %p2645_p3 }
  0x52   : > { %2653 = shalt.err (!%p2650_p7)
}
  0x53   : > { %s2654_s18 = scalar_lea.vmem %s284_s21, 2048  ;;  %p2662_p2 = scmp.lt.s32.totalorder %s284_s21, %s284_s21 }
  0x54   : > { %p2655_p9 = scmp.ne.s32.totalorder %s284_s21, %s2654_s18  ;;  %p2663_p1 = scmp.lt.s32.totalorder %s2654_s18, %s2654_s18 }
  0x56   : > { %p2657_p12 = pnand %p2655_p9, %p2934_p13  ;;  %p2664_p4 = por %p2663_p1, %p2662_p2 }
  0x58   : > { %p2658_p0 = pneg %p2657_p12 }
  0x5a   : > { %p2665_p8 = pnand %p2664_p4, %p2658_p0 }
  0x5c   : > { %2668 = shalt.err (!%p2665_p8)
}
  0x5d   : > { %2489 = dma.hbm_to_vmem [thread:$0]  (!%p2920_p11), %s4030_s5, 2048, %s284_s21, [#allocation9], %s2811_s14, %s2811_s14, %s2812_s12  }
  0x5e   : > { %s34_s1 = ssub.s32 %s2805_s30, %s2979_s22  ;;  %s37_s27 = sadd.s32 1, %s2801_s29 }
  0x5f   : > { %p35_p4 = scmp.eq.s32.totalorder %s34_s1, 0  ;;  %p44_p8 = scmp.ne.s32.totalorder %s2801_s29, %s2797_s28 }
  0x60   : > { %p45_p13 = scmp.eq.s32.totalorder %s2805_s30, 0  ;;  %p2504_p6 = scmp.lt.s32.totalorder %s2805_s30, 2 }
  0x61   : > { %s3007_s16 = scalar_select %p35_p4, %s2801_s29, %s37_s27  }
  0x62   : > { %p46_p10 = por %p45_p13, %p44_p8  ;;  %p4116_p3 = scmp.eq.s32.totalorder %s2890_s9, 1 }
  0x63   : > { %s300_s20 = sand.u32 1, %s2801_s29   ;;  %s2313_s23 = sshll.u32 %s2805_s30, 10 }
  0x64   : > { %p3011_p5 = por %p4116_p3, %p44_p8  ;;  %s2248_s25 = sshll.u32 %s300_s20, 6 }
  0x65   : > { %s3020_s14 = scalar_lea.hbm %s4025_s0, %s2313_s23  ;;  %s304_s12 = scalar_lea.vmem [#allocation2], %s2248_s25 }
  0x66   : > { %s312_s21 = sshll.u32 %s304_s12, 4  ;;  %p3022_p11 = pnand %p2504_p6, %p46_p10  ;;  %s3026_s21 = int_to_ptr.vmem [resolvable:$true] %s312_s21 }
  0x67   : > { %s3028_s18 = scalar_lea.sflag [#allocation3], %s300_s20  ;;  %s2669_s17 = scalar_lea.hbm %s3020_s14, 1024 }
  0x68   : > { %p2670_p7 = scmp.ne.s32.totalorder %s3020_s14, %s2669_s17  ;;  %p2671_p9 = pneg %p3022_p11 }
  0x69   : > { %s2674_s27 = scalar_lea.hbm %s4025_s0, 2048  ;;  %p2675_p2 = scmp.lt.u32.totalorder %s3020_s14, %s4025_s0 }
  0x6a   : > { %p2672_p12 = pnand %p2671_p9, %p2670_p7  ;;  %p2676_p1 = scmp.lt.u32.totalorder %s2674_s27, %s2669_s17 }
  0x6b   : > { %p2678_p8 = scmp.lt.u32.totalorder %s2669_s17, %s3020_s14 }
  0x6c   : > { %p2673_p0 = pneg %p2672_p12  ;;  %p2677_p4 = por %p2676_p1, %p2675_p2 }
  0x6e   : > { %p2679_p13 = por %p2678_p8, %p2677_p4 }
  0x70   : > { %p2680_p6 = pnand %p2679_p13, %p2673_p0 }
  0x72   : > { %2683 = shalt.err (!%p2680_p6)
}
  0x73   : > { %s2684_s20 = scalar_lea.vmem %s3026_s21, 1024  ;;  %s2814_s26 = smov [#allocation2]  }
  0x74   : > { %p2685_p10 = scmp.ne.s32.totalorder %s3026_s21, %s2684_s20  ;;  %s2689_s10 = sshll.u32 %s2814_s26, 4  ;;  %s2690_s10 = int_to_ptr.vmem [resolvable:$false] %s2689_s10 }
  0x75   : > { %s2691_s12 = scalar_lea.vmem %s2690_s10, 2048  ;;  %p2692_p12 = scmp.lt.s32.totalorder %s3026_s21, %s2690_s10 }
  0x76   : > { %p2687_p3 = pnand %p2685_p10, %p2671_p9  ;;  %p2693_p2 = scmp.lt.s32.totalorder %s2691_s12, %s2684_s20 }
  0x78   : > { %p2688_p7 = pneg %p2687_p3  ;;  %p2694_p1 = por %p2693_p2, %p2692_p12 }
  0x7a   : > { %p2695_p4 = pnand %p2694_p1, %p2688_p7 }
  0x7c   : > { %2698 = shalt.err (!%p2695_p4)
}
  0x7d   : > { %s2815_s17 = smov 64   ;;  %s2816_s19 = smov 4  }
  0x7e   : > { %2493 = dma.hbm_to_vmem [thread:$0]  (!%p3022_p11), %s3020_s14, 1024, %s3026_s21, %s3028_s18, %s2815_s17, %s2815_s17, %s2816_s19  }
  0x7f   : > { %p4119_p9 = scmp.ne.s32.totalorder %s4112_s13, 0 }
  0x81   : > { %324 = sbr.rel (%p4119_p9) target bundleno = 1217 (0x4c1), region = 48 }
  0x88   : > { %s3059_s1 = sand.u32 1, %s2797_s28   ;;  %p4120_p0 = scmp.ne.s32.totalorder %s4109_s11, 0 }
  0x89   : > { %s2253_s27 = sshll.u32 %s3059_s1, 6  ;;  %s327_s23 = scalar_lea.sflag [#allocation3], %s3059_s1 }
  0x8a   : > { %s3063_s25 = scalar_lea.vmem [#allocation2], %s2253_s27 }
  0x8b   : > { %2772 = dma.done.wait (%p4120_p0), %s327_s23, 1024  }
  0x8c   : > { %2774 = vsyncadd (%p4120_p0), %s327_s23, 4294966272  ;;  %p4121_p11 = scmp.eq.s32.totalorder %s2890_s9, 0 }
  0x8e   : > { %2776 = dma.done.wait (%p4121_p11), [#allocation6], 5632   ;;  %p4122_p8 = pmov %p4121_p11 }
  0x90   : > { %2778 = vsyncadd (%p4122_p8), [#allocation6], 4294961664  ;;  %p4123_p13 = pmov %p4122_p8 }
  0x91   : > { %p4124_p6 = pmov %p4122_p8 }
  0x92   : > { %2780 = dma.done.wait (%p4123_p13), [#allocation9], 2048  }
  0x93   : > { %2782 = vsyncadd (%p4124_p6), [#allocation9], 4294965248  ;;  %v2817_v0 = vmov 0   ;;  %v2555_v1 = vld [vmem:[#allocation5 + $0x4] ss:$24 sps:$4 sm:$0xff]   ;;  %vm510_vm0 = vcmask 261120  }
  0x94   : > { %567 = vmatprep.mubr.bf16.mxu0 %v2817_v0  ;;  %637 = vmatprep.mubr.bf16.mxu1 %v2817_v0  ;;  %v2557_v2 = vld [vmem:[#allocation5] ss:$24 sps:$4 sm:$0xff]   ;;  %v2558_v3 = vld [vmem:[#allocation5 + $0x34] ss:$24 sps:$4 sm:$0xff]   ;;  %v2560_v4 = vld [vmem:[#allocation5 + $0x30] ss:$24 sps:$4 sm:$0xff]  }
  0x95   : > { %535 = vmatprep.subr.bf16.mxu0 %v2555_v1  ;;  %2458 = vmatprep.subr.bf16.mxu1 %v2555_v1  ;;  %v2561_v5 = vld [vmem:[%s3063_s25] sm:$0xff]   ;;  %v3081_v6 = vld [vmem:[%s3063_s25 + $0x38] sm:$0xff]   ;;  %v2566_v9 = vld [vmem:[#allocation5 + $0x10] ss:$24 sps:$4 sm:$0xff]   ;;  %vm874_vm1 = vcmask 523264   ;;  %vm963_vm2 = vcmask 1046528  }
  0x96   : > { %536 = vmatpush1.bf16.msra.mxu0 %v2557_v2  ;;  %2460 = vmatpush1.bf16.msra.mxu1 %v2557_v2  ;;  %v2563_v7 = vld [vmem:[#allocation5 + $0x8] ss:$24 sps:$4 sm:$0xff]   ;;  %v2565_v8 = vld [vmem:[#allocation5 + $0xc] ss:$24 sps:$4 sm:$0xff]   ;;  %v2571_v11 = vld [vmem:[#allocation5 + $0x3c] ss:$24 sps:$4 sm:$0xff]  }
  0x97   : > { %537 = vmatprep.subr.bf16.mxu0 %v2558_v3  ;;  %2459 = vmatprep.subr.bf16.mxu1 %v2558_v3  ;;  %v2568_v10 = vld [vmem:[#allocation5 + $0x14] ss:$24 sps:$4 sm:$0xff]   ;;  %v2569_v12 = vld [vmem:[#allocation5 + $0x38] ss:$24 sps:$4 sm:$0xff]   ;;  %v2577_v14 = vld [vmem:[#allocation5 + $0x44] ss:$24 sps:$4 sm:$0xff]  }
  0x98   : > { %v2575_v13 = vld [vmem:[#allocation5 + $0x40] ss:$24 sps:$4 sm:$0xff]   ;;  %v2572_v15 = vld [vmem:[%s3063_s25 + $0x8] sm:$0xff]   ;;  %v2573_v16 = vld [vmem:[%s3063_s25 + $0x10] sm:$0xff]   ;;  %vm1230_vm3 = vcmask 1045504   ;;  %s2818_s11 = smov 64  }
  0x99   : > { %v2574_v17 = vld [vmem:[%s3063_s25 + $0x18] sm:$0xff]   ;;  %v2578_v18 = vld [vmem:[%s3063_s25 + $0x20] sm:$0xff]   ;;  %v2579_v19 = vld [vmem:[%s3063_s25 + $0x28] sm:$0xff]   ;;  %vm1779_vm4 = vcmask 1041409   ;;  %vm1781_vm5 = vcmask 1042434   ;;  %vm1783_vm6 = vcmask 1043459  }
  0x9a   : > { %538 = vmatpush1.bf16.msra.mxu0 %v2560_v4  ;;  %2461 = vmatpush1.bf16.msra.mxu1 %v2560_v4  ;;  %v2580_v20 = vld [vmem:[%s3063_s25 + $0x30] sm:$0xff]   ;;  %vm1785_vm7 = vcmask 1044484   ;;  %vm1787_vm8 = vcmask 1045509   ;;  %vm1536_vm9 = vcmask 1044480   ;;  %vm1641_vm10 = vcmask 1043456   ;;  %s2258_s21 = sshll.u32 %s3059_s1, 4 }
  0x9b   : > { %648 = vmatprep.subr.bf16.mxu1 %v2565_v8  ;;  %761 = vmatprep.subr.bf16.mxu0 %v2568_v10  ;;  %vm1789_vm11 = vcmask 1046534   ;;  %vm1791_vm12 = vcmask 1047559   ;;  %vm1288_vm13 = vcmask 1046016   ;;  %vm1052_vm14 = vcmask 1048064   ;;  %s3931_s15 = scalar_lea.vmem [#allocation11], %s2258_s21  ;;  %s2314_s26 = sshll.u32 %s2890_s9, 8 }
  0x9c   : > { %vm1699_vm15 = vcmask 519168   ;;  %s2111_s10 = sshll.u32 %s3931_s15, 4  ;;  %s3952_s19 = scalar_lea.hbm %s4033_s8, %s2314_s26  ;;  %s2112_s10 = int_to_ptr.vmem [resolvable:$true] %s2111_s10 }
  0x9d   : > { %2279 = vmatmul.mubr.msk.bf16.vlgmr.msra.gmra.mrb[0].mxu0 %vm510_vm0, %v2561_v5  ;;  %2286 = vmatmul.mubr.msk.bf16.vlgmr.msra.gmra.mrb[0].mxu1 %vm510_vm0, %v3081_v6  ;;  %s2084_s27 = scalar_lea.sflag [#allocation12], %s3059_s1  ;;  %s2699_s23 = scalar_lea.vmem %s2112_s10, 256 }
  0x9e   : > { %649 = vmatpush1.bf16.msra.mxu1 %v2563_v7  ;;  %762 = vmatpush1.bf16.msra.mxu0 %v2566_v9  ;;  %p2700_p10 = scmp.ne.s32.totalorder %s2112_s10, %s2699_s23  ;;  %s2822_s25 = smov [#allocation11]  }
  0x9f   : > { %650 = vmatprep.subr.bf16.mxu1 %v2571_v11  ;;  %577 = vmatprep.mubr.bf16.mxu0 %v2817_v0 }
  0xa0   : > { %680 = vmatprep.mubr.bf16.mxu1 %v2817_v0  ;;  %763 = vmatprep.subr.bf16.mxu0 %v2577_v14  ;;  %p2701_p3 = pnand %p2700_p10, %p3011_p5 }
  0xa2   : > { %651 = vmatpush1.bf16.msra.mxu1 %v2569_v12  ;;  %764 = vmatpush1.bf16.msra.mxu0 %v2575_v13  ;;  %p2702_p7 = pneg %p2701_p3 }
  0xa5   : > { %2280 = vmatmul.mubr.msk.bf16.gmra.mrb[4].mxu0 %vm510_vm0, %v2572_v15  ;;  %2287 = vmatmul.mubr.msk.bf16.vlgmr.msra.gmra.mrb[4].mxu1 %vm510_vm0, %v2561_v5 }
  0xa6   : > { %587 = vmatprep.mubr.bf16.mxu0 %v2817_v0  ;;  %690 = vmatprep.mubr.bf16.mxu1 %v2817_v0 }
  0xad   : > { %2281 = vmatmul.mubr.msk.bf16.gmra.mrb[8].mxu0 %vm510_vm0, %v2573_v16  ;;  %2288 = vmatmul.mubr.msk.bf16.gmra.mrb[8].mxu1 %vm510_vm0, %v2572_v15 }
  0xae   : > { %597 = vmatprep.mubr.bf16.mxu0 %v2817_v0  ;;  %700 = vmatprep.mubr.bf16.mxu1 %v2817_v0 }
  0xb5   : > { %2282 = vmatmul.mubr.msk.bf16.gmra.mrb[12].mxu0 %vm510_vm0, %v2574_v17  ;;  %2289 = vmatmul.mubr.msk.bf16.gmra.mrb[12].mxu1 %vm510_vm0, %v2573_v16 }
  0xb6   : > { %607 = vmatprep.mubr.bf16.mxu0 %v2817_v0  ;;  %710 = vmatprep.mubr.bf16.mxu1 %v2817_v0 }
  0xbd   : > { %2283 = vmatmul.mubr.msk.bf16.gmra.mrb[16].mxu0 %vm510_vm0, %v2578_v18  ;;  %2290 = vmatmul.mubr.msk.bf16.gmra.mrb[16].mxu1 %vm510_vm0, %v2574_v17 }
  0xbe   : > { %617 = vmatprep.mubr.bf16.mxu0 %v2817_v0  ;;  %720 = vmatprep.mubr.bf16.mxu1 %v2817_v0 }
  0xc5   : > { %2284 = vmatmul.mubr.msk.bf16.gmra.mrb[20].mxu0 %vm510_vm0, %v2579_v19  ;;  %2291 = vmatmul.mubr.msk.bf16.gmra.mrb[20].mxu1 %vm510_vm0, %v2578_v18 }
  0xc6   : > { %627 = vmatprep.mubr.bf16.mxu0 %v2817_v0  ;;  %730 = vmatprep.mubr.bf16.mxu1 %v2817_v0 }
  0xcd   : > { %2285 = vmatmul.mubr.msk.bf16.gmra.mrb[24].mxu0 %vm510_vm0, %v2580_v20  ;;  %2292 = vmatmul.mubr.msk.bf16.gmra.mrb[24].mxu1 %vm510_vm0, %v2579_v19 }
  0xce   : > { %793 = vmatprep.mubr.bf16.mxu0 %v2817_v0  ;;  %740 = vmatprep.mubr.bf16.mxu1 %v2817_v0 }
  0xd5   : > { %2295 = vmatmul.mubr.msk.bf16.vlgmr.msra.gmra.mrb[28].mxu0 %vm510_vm0, %v2561_v5  ;;  %2293 = vmatmul.mubr.msk.bf16.gmra.mrb[28].mxu1 %vm510_vm0, %v2580_v20 }
  0xd6   : > { %803 = vmatprep.mubr.bf16.mxu0 %v2817_v0  ;;  %750 = vmatprep.mubr.bf16.mxu1 %v2817_v0 }
  0xdd   : > { %2296 = vmatmul.mubr.msk.bf16.gmra.mrb[32].mxu0 %vm510_vm0, %v2572_v15  ;;  %2294 = vmatmul.mubr.msk.bf16.gmra.mrb[32].mxu1 %vm510_vm0, %v3081_v6 }
  0xde   : > { %813 = vmatprep.mubr.bf16.mxu0 %v2817_v0 }
  0xe5   : > { %2297 = vmatmul.mubr.msk.bf16.gmra.mrb[36].mxu0 %vm510_vm0, %v2573_v16 }
  0xe6   : > { %823 = vmatprep.mubr.bf16.mxu0 %v2817_v0 }
  0xed   : > { %2298 = vmatmul.mubr.msk.bf16.gmra.mrb[40].mxu0 %vm510_vm0, %v2574_v17 }
  0xee   : > { %833 = vmatprep.mubr.bf16.mxu0 %v2817_v0 }
  0xf5   : > { %2299 = vmatmul.mubr.msk.bf16.gmra.mrb[44].mxu0 %vm510_vm0, %v2578_v18 }
  0xf6   : > { %843 = vmatprep.mubr.bf16.mxu0 %v2817_v0 }
  0xfd   : > { %2300 = vmatmul.mubr.msk.bf16.gmra.mrb[48].mxu0 %vm510_vm0, %v2579_v19 }
  0xfe   : > { %853 = vmatprep.mubr.bf16.mxu0 %v2817_v0 }
 0x105   : > { %2301 = vmatmul.mubr.msk.bf16.gmra.mrb[52].mxu0 %vm510_vm0, %v2580_v20 }
 0x106   : > { %863 = vmatprep.mubr.bf16.mxu0 %v2817_v0 }
 0x10d   : > { %2302 = vmatmul.mubr.msk.bf16.gmra.mrb[56].mxu0 %vm510_vm0, %v3081_v6  ;;  %vm1054_vm0 = vcmask 1047040  }
 0x170   : > { %v3138_v21 = vpop.f32.mrb[0].mxu0  ;;  %v3140_v22 = vpop.f32.mrb[0].mxu1 }
 0x171   : > { %4125 = vst [vmem:[#allocation20_spill] sm:$0xff] %v3138_v21  ;;  %4126 = vst [vmem:[#allocation21_spill] sm:$0xff] %v3140_v22  ;;  %v3142_v23 = vpop.f32.mrb[1].mxu0  ;;  %v938_v24 = vsel %vm874_vm1, %v3140_v22, -inf  ;;  %v3146_v25 = vpop.f32.mrb[1].mxu1  ;;  %v875_v29 = vsel %vm874_vm1, %v3138_v21, -inf }
 0x172   : > { %4127 = vst [vmem:[#allocation22_spill] sm:$0xff] %v3146_v25  ;;  %v3148_v26 = vpop.f32.mrb[2].mxu0  ;;  %v985_v27 = vrot.slane %v3146_v25, 1  ;;  %v3151_v28 = vpop.f32.mrb[2].mxu1  ;;  %v964_v30 = vrot.slane %v3142_v23, 1 }
 0x173   : > { %4128 = vst [vmem:[#allocation23_spill] sm:$0xff] %v3148_v26  ;;  %4129 = vst [vmem:[#allocation24_spill] sm:$0xff] %v3151_v28  ;;  %v876_v31 = vsel %vm874_vm1, %v3148_v26, -inf  ;;  %v3158_v32 = vpop.f32.mrb[3].mxu0  ;;  %v939_v33 = vsel %vm874_vm1, %v3151_v28, -inf  ;;  %v3162_v34 = vpop.f32.mrb[3].mxu1 }
 0x174   : > { %v877_v35 = vmax.f32 %v875_v29, %v876_v31  ;;  %v4046_v36 = vrot.slane %v3158_v32, 1  ;;  %v3165_v37 = vmax.f32 %v938_v24, %v939_v33  ;;  %v4040_v38 = vrot.slane %v3162_v34, 1 }
 0x176   : > { %v878_v39 = vrot.slane %v877_v35, 4  ;;  %v3171_v40 = vsel %vm963_vm2, %v964_v30, %v4046_v36  ;;  %v3176_v41 = vsel %vm963_vm2, %v985_v27, %v4040_v38 }
 0x178   : > { %v879_v42 = vmax.f32 %v877_v35, %v878_v39  ;;  %v3178_v43 = vpop.f32.mrb[4].mxu0  ;;  %v682_v44 = vpop.f32.mrb[4].mxu1 }
 0x179   : > { %4130 = vst [vmem:[#allocation25_spill] sm:$0xff] %v3178_v43  ;;  %v1142_v45 = vrot.slane %v682_v44, 1  ;;  %v1231_v46 = vrot.slane %v682_v44, 2  ;;  %v3180_v47 = vpop.f32.mrb[5].mxu0  ;;  %v3182_v48 = vpop.f32.mrb[5].mxu1  ;;  %v884_v50 = vsel %vm874_vm1, %v3178_v43, -inf }
 0x17a   : > { %v880_v49 = vrot.slane %v879_v42, 2  ;;  %v3186_v51 = vpop.f32.mrb[6].mxu0  ;;  %v3188_v52 = vpop.f32.mrb[6].mxu1  ;;  %v1376_v53 = vrot.slane %v3182_v48, 1  ;;  %v967_v59 = vrot.slane %v3180_v47, 1 }
 0x17b   : > { %4131 = vst [vmem:[#allocation26_spill] sm:$0xff] %v3186_v51  ;;  %v885_v54 = vsel %vm874_vm1, %v3186_v51, -inf  ;;  %v4043_v55 = vrot.slane %v3188_v52, 2  ;;  %v3194_v56 = vpop.f32.mrb[7].mxu0  ;;  %v3196_v57 = vpop.f32.mrb[7].mxu1  ;;  %v1143_v58 = vrot.slane %v3188_v52, 1 }
 0x17c   : > { %v886_v60 = vmax.f32 %v884_v50, %v885_v54  ;;  %v4045_v61 = vrot.slane %v3194_v56, 1  ;;  %v1377_v62 = vrot.slane %v3196_v57, 1  ;;  %v881_v1 = vmax.f32 %v879_v42, %v880_v49 }
 0x17d   : > { %1168 = vrot.lane.b32.xlu1 %v1143_v58, %s2818_s11  ;;  %v1144_v63 = vsel %vm963_vm2, %v1142_v45, %v1143_v58  ;;  %v3207_v0 = vsel %vm1230_vm3, %v1231_v46, %v4043_v55 }
 0x17e   : > { %v887_v2 = vrot.slane %v886_v60, 4  ;;  %v3212_v3 = vsel %vm963_vm2, %v967_v59, %v4045_v61  ;;  %1402 = vrot.lane.b32.xlu0 %v1377_v62, %s2818_s11  ;;  %v1378_v4 = vsel %vm963_vm2, %v1376_v53, %v1377_v62  ;;  %v882_v12 = vrot.slane %v881_v1, 1 }
 0x180   : > { %v888_v5 = vmax.f32 %v886_v60, %v887_v2  ;;  %v3216_v6 = vpop.f32.mrb[8].mxu0  ;;  %v692_v7 = vpop.f32.mrb[8].mxu1  ;;  %v883_v50 = vmax.f32 %v881_v1, %v882_v12 }
 0x181   : > { %4132 = vst [vmem:[#allocation27_spill] sm:$0xff] %v3216_v6  ;;  %v1145_v8 = vrot.slane %v692_v7, 1  ;;  %v1234_v9 = vrot.slane %v692_v7, 2  ;;  %v3218_v10 = vpop.f32.mrb[9].mxu0  ;;  %v3220_v11 = vpop.f32.mrb[9].mxu1  ;;  %v893_v14 = vsel %vm874_vm1, %v3216_v6, -inf }
 0x182   : > { %v889_v13 = vrot.slane %v888_v5, 2  ;;  %v1379_v15 = vrot.slane %v3220_v11, 1  ;;  %v3225_v16 = vpop.f32.mrb[10].mxu0  ;;  %v3227_v17 = vpop.f32.mrb[10].mxu1  ;;  %v970_v18 = vrot.slane %v3218_v10, 1  ;;  %1166 = vrot.lane.b32.xlu0 %v1144_v63, %s2818_s11 }
 0x183   : > { %4133 = vst [vmem:[#allocation28_spill] sm:$0xff] %v3225_v16  ;;  %v894_v19 = vsel %vm874_vm1, %v3225_v16, -inf  ;;  %v1146_v20 = vrot.slane %v3227_v17, 1  ;;  %v4041_v24 = vrot.slane %v3227_v17, 2  ;;  %v3235_v27 = vpop.f32.mrb[11].mxu0  ;;  %v3237_v29 = vpop.f32.mrb[11].mxu1 }
 0x184   : > { %v890_v30 = vmax.f32 %v888_v5, %v889_v13  ;;  %v895_v31 = vmax.f32 %v893_v14, %v894_v19  ;;  %v4044_v33 = vrot.slane %v3235_v27, 1  ;;  %v1380_v35 = vrot.slane %v3237_v29, 1 }
 0x185   : > { %1172 = vrot.lane.b32.xlu1 %v1146_v20, %s2818_s11  ;;  %v1147_v39 = vsel %vm963_vm2, %v1145_v8, %v1146_v20  ;;  %v3246_v42 = vsel %vm1230_vm3, %v1234_v9, %v4041_v24 }
 0x186   : > { %v891_v44 = vrot.slane %v890_v30, 1  ;;  %v896_v45 = vrot.slane %v895_v31, 4  ;;  %v1381_v46 = vsel %vm963_vm2, %v1379_v15, %v1380_v35  ;;  %v3252_v49 = vsel %vm963_vm2, %v970_v18, %v4044_v33  ;;  %1400 = vrot.lane.b32.xlu0 %v1378_v4, %s2818_s11 }
 0x188   : > { %v892_v53 = vmax.f32 %v890_v30, %v891_v44  ;;  %v897_v54 = vmax.f32 %v895_v31, %v896_v45  ;;  %v3255_v58 = vpop.f32.mrb[12].mxu0  ;;  %v702_v59 = vpop.f32.mrb[12].mxu1 }
 0x189   : > { %4134 = vst [vmem:[#allocation29_spill] sm:$0xff] %v3255_v58  ;;  %v1148_v60 = vrot.slane %v702_v59, 1  ;;  %v1237_v62 = vrot.slane %v702_v59, 2  ;;  %1406 = vrot.lane.b32.xlu1 %v1380_v35, %s2818_s11  ;;  %v3258_v63 = vpop.f32.mrb[13].mxu0  ;;  %v3260_v2 = vpop.f32.mrb[13].mxu1  ;;  %v902_v4 = vsel %vm874_vm1, %v3255_v58, -inf }
 0x18a   : > { %v1780_v5 = vsel %vm1779_vm4, %v892_v53, %v883_v50  ;;  %v898_v7 = vrot.slane %v897_v54, 2  ;;  %v1382_v1 = vrot.slane %v3260_v2, 1  ;;  %v3266_v8 = vpop.f32.mrb[14].mxu0  ;;  %v3268_v9 = vpop.f32.mrb[14].mxu1  ;;  %v973_v12 = vrot.slane %v3258_v63, 1  ;;  %1170 = vrot.lane.b32.xlu0 %v1147_v39, %s2818_s11 }
 0x18b   : > { %4135 = vst [vmem:[#allocation30_spill] sm:$0xff] %v3266_v8  ;;  %v903_v13 = vsel %vm874_vm1, %v3266_v8, -inf  ;;  %v1149_v14 = vrot.slane %v3268_v9, 1  ;;  %v4039_v15 = vrot.slane %v3268_v9, 2  ;;  %v3276_v18 = vpop.f32.mrb[15].mxu0  ;;  %v3278_v19 = vpop.f32.mrb[15].mxu1 }
 0x18c   : > { %v899_v20 = vmax.f32 %v897_v54, %v898_v7  ;;  %v904_v30 = vmax.f32 %v902_v4, %v903_v13  ;;  %v4042_v31 = vrot.slane %v3276_v18, 1  ;;  %v1383_v35 = vrot.slane %v3278_v19, 1 }
 0x18d   : > { %1404 = vrot.lane.b32.xlu1 %v1381_v46, %s2818_s11  ;;  %v1150_v39 = vsel %vm963_vm2, %v1148_v60, %v1149_v14  ;;  %v3287_v44 = vsel %vm1230_vm3, %v1237_v62, %v4039_v15 }
 0x18e   : > { %v900_v45 = vrot.slane %v899_v20, 1  ;;  %v905_v50 = vrot.slane %v904_v30, 4  ;;  %v1384_v53 = vsel %vm963_vm2, %v1382_v1, %v1383_v35  ;;  %v3293_v54 = vsel %vm963_vm2, %v973_v12, %v4042_v31  ;;  %1174 = vrot.lane.b32.xlu0 %v1150_v39, %s2818_s11 }
 0x190   : > { %v901_v46 = vmax.f32 %v899_v20, %v900_v45  ;;  %v906_v59 = vmax.f32 %v904_v30, %v905_v50  ;;  %v3296_v60 = vpop.f32.mrb[16].mxu0  ;;  %v712_v7 = vpop.f32.mrb[16].mxu1 }
 0x191   : > { %4136 = vst [vmem:[#allocation31_spill] sm:$0xff] %v3296_v60  ;;  %v1151_v4 = vrot.slane %v712_v7, 1  ;;  %v1240_v62 = vrot.slane %v712_v7, 2  ;;  %1176 = vrot.lane.b32.xlu1 %v1149_v14, %s2818_s11  ;;  %v3299_v13 = vpop.f32.mrb[17].mxu0  ;;  %v3301_v1 = vpop.f32.mrb[17].mxu1  ;;  %v911_v38 = vsel %vm874_vm1, %v3296_v60, -inf }
 0x192   : > { %v1782_v15 = vsel %vm1781_vm5, %v901_v46, %v1780_v5  ;;  %v907_v12 = vrot.slane %v906_v59, 2  ;;  %v1385_v20 = vrot.slane %v3301_v1, 1  ;;  %v3307_v30 = vpop.f32.mrb[18].mxu0  ;;  %v3309_v39 = vpop.f32.mrb[18].mxu1  ;;  %v976_v45 = vrot.slane %v3299_v13, 1  ;;  %1408 = vrot.lane.b32.xlu0 %v1384_v53, %s2818_s11 }
 0x193   : > { %4137 = vst [vmem:[#allocation32_spill] sm:$0xff] %v3307_v30  ;;  %v912_v14 = vsel %vm874_vm1, %v3307_v30, -inf  ;;  %v1152_v50 = vrot.slane %v3309_v39, 1  ;;  %v4049_v5 = vrot.slane %v3309_v39, 2  ;;  %v3317_v46 = vpop.f32.mrb[19].mxu0  ;;  %v3319_v7 = vpop.f32.mrb[19].mxu1 }
 0x194   : > { %v908_v24 = vmax.f32 %v906_v59, %v907_v12  ;;  %v913_v31 = vmax.f32 %v911_v38, %v912_v14  ;;  %v4051_v55 = vrot.slane %v3317_v46, 1  ;;  %v1386_v33 = vrot.slane %v3319_v7, 1 }
 0x195   : > { %1410 = vrot.lane.b32.xlu1 %v1383_v35, %s2818_s11  ;;  %v1153_v53 = vsel %vm963_vm2, %v1151_v4, %v1152_v50  ;;  %v3328_v61 = vsel %vm1230_vm3, %v1240_v62, %v4049_v5  ;;  %v941_v62 = vrot.slane %v3165_v37, 4 }
 0x196   : > { %v909_v36 = vrot.slane %v908_v24, 1  ;;  %v914_v22 = vrot.slane %v913_v31, 4  ;;  %v1387_v28 = vsel %vm963_vm2, %v1385_v20, %v1386_v33  ;;  %v3334_v38 = vsel %vm963_vm2, %v976_v45, %v4051_v55  ;;  %1178 = vrot.lane.b32.xlu0 %v1153_v53, %s2818_s11 }
 0x197   : > { %v942_v16 = vmax.f32 %v3165_v37, %v941_v62 }
 0x198   : > { %v910_v35 = vmax.f32 %v908_v24, %v909_v36  ;;  %v915_v59 = vmax.f32 %v913_v31, %v914_v22  ;;  %v3337_v4 = vpop.f32.mrb[20].mxu0  ;;  %v722_v12 = vpop.f32.mrb[20].mxu1 }
 0x199   : > { %4138 = vst [vmem:[#allocation33_spill] sm:$0xff] %v3337_v4  ;;  %v1154_v14 = vrot.slane %v722_v12, 1  ;;  %v1243_v5 = vrot.slane %v722_v12, 2  ;;  %1180 = vrot.lane.b32.xlu1 %v1152_v50, %s2818_s11  ;;  %v3341_v20 = vpop.f32.mrb[21].mxu0  ;;  %v3343_v60 = vpop.f32.mrb[21].mxu1  ;;  %v920_v36 = vsel %vm874_vm1, %v3337_v4, -inf }
 0x19a   : > { %4139 = vst [vmem:[#allocation34_spill] sm:$0xff] %v3341_v20  ;;  %4140 = vst [vmem:[#allocation35_spill] sm:$0xff] %v3343_v60  ;;  %v1784_v45 = vsel %vm1783_vm6, %v910_v35, %v1782_v15  ;;  %v916_v55 = vrot.slane %v915_v59, 2  ;;  %v1388_v22 = vrot.slane %v3343_v60, 1  ;;  %v3349_v24 = vpop.f32.mrb[22].mxu0  ;;  %v3351_v31 = vpop.f32.mrb[22].mxu1  ;;  %1412 = vrot.lane.b32.xlu0 %v1387_v28, %s2818_s11 }
 0x19b   : > { %4141 = vst [vmem:[#allocation36_spill] sm:$0xff] %v3349_v24  ;;  %4142 = vst [vmem:[#allocation37_spill] sm:$0xff] %v3351_v31  ;;  %v979_v53 = vrot.slane %v3341_v20, 1  ;;  %v921_v50 = vsel %vm874_vm1, %v3349_v24, -inf  ;;  %v1155_v12 = vrot.slane %v3351_v31, 1  ;;  %v4061_v15 = vrot.slane %v3351_v31, 2 }
 0x19c   : > { %v3359_v35 = vpop.f32.mrb[23].mxu0  ;;  %v3361_v4 = vpop.f32.mrb[23].mxu1  ;;  %v917_v30 = vmax.f32 %v915_v59, %v916_v55  ;;  %v922_v58 = vmax.f32 %v920_v36, %v921_v50  ;;  %v943_v36 = vrot.slane %v942_v16, 2 }
 0x19d   : > { %4143 = vst [vmem:[#allocation38_spill] sm:$0xff] %v3361_v4  ;;  %v4063_v8 = vrot.slane %v3359_v35, 1  ;;  %v1389_v6 = vrot.slane %v3361_v4, 1  ;;  %1414 = vrot.lane.b32.xlu1 %v1386_v33, %s2818_s11  ;;  %v1156_v28 = vsel %vm963_vm2, %v1154_v14, %v1155_v12  ;;  %v3371_v24 = vsel %vm1230_vm3, %v1243_v5, %v4061_v15 }
 0x19e   : > { %4144 = vst [vmem:[#allocation39_spill] sm:$0xff] %v3371_v24  ;;  %v918_v43 = vrot.slane %v917_v30, 1  ;;  %v923_v51 = vrot.slane %v922_v58, 4  ;;  %1182 = vrot.lane.b32.xlu0 %v1156_v28, %s2818_s11 }
 0x19f   : > { %v1390_v55 = vsel %vm963_vm2, %v1388_v22, %v1389_v6  ;;  %v3377_v59 = vsel %vm963_vm2, %v979_v53, %v4063_v8 }
 0x1a0   : > { %v919_v37 = vmax.f32 %v917_v30, %v918_v43  ;;  %v924_v33 = vmax.f32 %v922_v58, %v923_v51  ;;  %v3380_v62 = vpop.f32.mrb[24].mxu0  ;;  %v732_v14 = vpop.f32.mrb[24].mxu1 }
 0x1a1   : > { %4145 = vst [vmem:[#allocation40_spill] sm:$0xff] %v3380_v62  ;;  %v1157_v5 = vrot.slane %v732_v14, 1  ;;  %v1246_v50 = vrot.slane %v732_v14, 2  ;;  %1184 = vrot.lane.b32.xlu1 %v1155_v12, %s2818_s11  ;;  %v3383_v15 = vpop.f32.mrb[25].mxu0  ;;  %v3385_v22 = vpop.f32.mrb[25].mxu1  ;;  %v929_v53 = vsel %vm874_vm1, %v3380_v62, -inf }
 0x1a2   : > { %4146 = vst [vmem:[#allocation41_spill] sm:$0xff] %v3383_v15  ;;  %4147 = vst [vmem:[#allocation42_spill] sm:$0xff] %v3385_v22  ;;  %v925_v21 = vrot.slane %v924_v33, 2  ;;  %v1391_v28 = vrot.slane %v3385_v22, 1  ;;  %v3390_v43 = vpop.f32.mrb[26].mxu0  ;;  %v3392_v51 = vpop.f32.mrb[26].mxu1  ;;  %v1786_v58 = vsel %vm1785_vm7, %v919_v37, %v1784_v45  ;;  %1416 = vrot.lane.b32.xlu0 %v1390_v55, %s2818_s11  ;;  %v944_v37 = vmax.f32 %v942_v16, %v943_v36 }
 0x1a3   : > { %4148 = vst [vmem:[#allocation43_spill] sm:$0xff] %v3390_v43  ;;  %4149 = vst [vmem:[#allocation44_spill] sm:$0xff] %v3392_v51  ;;  %v982_v30 = vrot.slane %v3383_v15, 1  ;;  %v930_v12 = vsel %vm874_vm1, %v3390_v43, -inf  ;;  %v1158_v14 = vrot.slane %v3392_v51, 1  ;;  %v4073_v8 = vrot.slane %v3392_v51, 2 }
 0x1a4   : > { %v3401_v62 = vpop.f32.mrb[27].mxu0  ;;  %v3403_v26 = vpop.f32.mrb[27].mxu1  ;;  %v926_v25 = vmax.f32 %v924_v33, %v925_v21  ;;  %v931_v22 = vmax.f32 %v929_v53, %v930_v12 }
 0x1a5   : > { %4150 = vst [vmem:[#allocation45_spill] sm:$0xff] %v3403_v26  ;;  %v4074_v20 = vrot.slane %v3401_v62, 1  ;;  %v1392_v45 = vrot.slane %v3403_v26, 1  ;;  %1418 = vrot.lane.b32.xlu1 %v1389_v6, %s2818_s11  ;;  %v1159_v55 = vsel %vm963_vm2, %v1157_v5, %v1158_v14  ;;  %v3412_v43 = vsel %vm1230_vm3, %v1246_v50, %v4073_v8 }
 0x1a6   : > { %4151 = vst [vmem:[#allocation46_spill] sm:$0xff] %v3412_v43  ;;  %v927_v15 = vrot.slane %v926_v25, 1  ;;  %v932_v4 = vrot.slane %v931_v22, 4  ;;  %1186 = vrot.lane.b32.xlu0 %v1159_v55, %s2818_s11  ;;  %v945_v5 = vrot.slane %v944_v37, 1 }
 0x1a7   : > { %v1393_v60 = vsel %vm963_vm2, %v1391_v28, %v1392_v45  ;;  %v3418_v21 = vsel %vm963_vm2, %v982_v30, %v4074_v20 }
 0x1a8   : > { %v928_v6 = vmax.f32 %v926_v25, %v927_v15  ;;  %v933_v16 = vmax.f32 %v931_v22, %v932_v4  ;;  %v795_v33 = vpop.f32.mrb[28].mxu0  ;;  %v742_v36 = vpop.f32.mrb[28].mxu1 }
 0x1a9   : > { %v1480_v50 = vrot.slane %v795_v33, 2  ;;  %1188 = vrot.lane.b32.xlu1 %v1158_v14, %s2818_s11  ;;  %v797_v53 = vpop.f32.mrb[29].mxu0  ;;  %v1160_v28 = vrot.slane %v742_v36, 1  ;;  %v1249_v12 = vrot.slane %v742_v36, 2  ;;  %v3422_v8 = vpop.f32.mrb[29].mxu1  ;;  %v1537_v20 = vrot.slane %v795_v33, 3 }
 0x1aa   : > { %4152 = vst [vmem:[#allocation47_spill] sm:$0xff] %v3422_v8  ;;  %v934_v30 = vrot.slane %v933_v16, 2  ;;  %v3424_v26 = vpop.f32.mrb[30].mxu0  ;;  %v1394_v25 = vrot.slane %v3422_v8, 1  ;;  %v3427_v4 = vpop.f32.mrb[30].mxu1  ;;  %v1788_v15 = vsel %vm1787_vm8, %v928_v6, %v1786_v58  ;;  %1420 = vrot.lane.b32.xlu0 %v1393_v60, %s2818_s11  ;;  %v1642_v8 = vrot.slane %v797_v53, 4 }
 0x1ab   : > { %4153 = vst [vmem:[#allocation48_spill] sm:$0xff] %v3427_v4  ;;  %v4079_v22 = vrot.slane %v3424_v26, 2  ;;  %v1538_v14 = vrot.slane %v3424_v26, 3  ;;  %v3433_v55 = vpop.f32.mrb[31].mxu0  ;;  %v1161_v36 = vrot.slane %v3427_v4, 1  ;;  %v4081_v33 = vrot.slane %v3427_v4, 2 }
 0x1ac   : > { %4154 = vst [vmem:[#allocation49_spill] sm:$0xff] %v3433_v55  ;;  %v3437_v51 = vpop.f32.mrb[31].mxu1  ;;  %v935_v43 = vmax.f32 %v933_v16, %v934_v30  ;;  %v4084_v31 = vrot.slane %v3433_v55, 4 }
 0x1ad   : > { %4155 = vst [vmem:[#allocation50_spill] sm:$0xff] %v3437_v51  ;;  %v1395_v58 = vrot.slane %v3437_v51, 1  ;;  %1422 = vrot.lane.b32.xlu1 %v1392_v45, %s2818_s11  ;;  %v1539_v60 = vsel %vm1536_vm9, %v1537_v20, %v1538_v14  ;;  %v1162_v6 = vsel %vm963_vm2, %v1160_v28, %v1161_v36  ;;  %v3447_v24 = vsel %vm1230_vm3, %v1480_v50, %v4079_v22 }
 0x1ae   : > { %v3452_v16 = vsel %vm1230_vm3, %v1249_v12, %v4081_v33  ;;  %v936_v53 = vrot.slane %v935_v43, 1  ;;  %v3458_v45 = vsel %vm1641_vm10, %v1642_v8, %v4084_v31  ;;  %1561 = vrot.lane.b32.xlu0 %v1539_v60, %s2818_s11  ;;  %v946_v22 = vmax.f32 %v944_v37, %v945_v5 }
 0x1af   : > { %4156 = vst [vmem:[#allocation51_spill] sm:$0xff] %v3452_v16  ;;  %v1396_v30 = vsel %vm963_vm2, %v1394_v25, %v1395_v58  ;;  %4157 = vst [vmem:[#allocation52_spill] sm:$0xff] %v3458_v45 }
 0x1b0   : > { %v937_v20 = vmax.f32 %v935_v43, %v936_v53  ;;  %v805_v28 = vpop.f32.mrb[32].mxu0  ;;  %v752_v50 = vpop.f32.mrb[32].mxu1 }
 0x1b1   : > { %1563 = vrot.lane.b32.xlu1 %v1538_v14, %s2818_s11  ;;  %v807_v51 = vpop.f32.mrb[33].mxu0  ;;  %v1163_v12 = vrot.slane %v752_v50, 1  ;;  %v1252_v33 = vrot.slane %v752_v50, 2  ;;  %v3462_v4 = vpop.f32.mrb[33].mxu1  ;;  %v1483_v25 = vrot.slane %v805_v28, 2  ;;  %v1540_v16 = vrot.slane %v805_v28, 3 }
 0x1b2   : > { %4158 = vst [vmem:[#allocation53_spill] sm:$0xff] %v3462_v4  ;;  %v3464_v55 = vpop.f32.mrb[34].mxu0  ;;  %v1397_v8 = vrot.slane %v3462_v4, 1  ;;  %v3467_v60 = vpop.f32.mrb[34].mxu1  ;;  %v1790_v43 = vsel %vm1789_vm11, %v937_v20, %v1788_v15  ;;  %1190 = vrot.lane.b32.xlu0 %v1162_v6, %s2818_s11  ;;  %v1645_v31 = vrot.slane %v807_v51, 4 }
 0x1b3   : > { %4159 = vst [vmem:[#allocation54_spill] sm:$0xff] %v3467_v60  ;;  %v4087_v37 = vrot.slane %v3464_v55, 2  ;;  %v1541_v5 = vrot.slane %v3464_v55, 3  ;;  %v3473_v14 = vpop.f32.mrb[35].mxu0  ;;  %v1164_v53 = vrot.slane %v3467_v60, 1  ;;  %v3477_v50 = vpop.f32.mrb[35].mxu1  ;;  %v3482_v15 = vsel %vm1791_vm12, %v946_v22, %v1790_v43 }
 0x1b4   : > { %4160 = vst [vmem:[#allocation55_spill] sm:$0xff] %v3473_v14  ;;  %4161 = vst [vmem:[#allocation56_spill] sm:$0xff] %v3477_v50  ;;  %v1398_v45 = vrot.slane %v3477_v50, 1  ;;  %v4163_v51 = vrot.slane %v3467_v60, 2  ;;  %v4165_v22 = vrot.slane %v3473_v14, 4 }
 0x1b5   : > { %4162 = vst [vmem:[#allocation57_spill] sm:$0xff] %v3482_v15  ;;  %1192 = vrot.lane.b32.xlu1 %v1161_v36, %s2818_s11  ;;  %v1542_v6 = vsel %vm1536_vm9, %v1540_v16, %v1541_v5  ;;  %v1165_v20 = vsel %vm963_vm2, %v1163_v12, %v1164_v53  ;;  %v3490_v28 = vsel %vm1230_vm3, %v1483_v25, %v4087_v37 }
 0x1b6   : > { %v3495_v4 = vsel %vm1230_vm3, %v1252_v33, %v4163_v51  ;;  %v1399_v50 = vsel %vm963_vm2, %v1397_v8, %v1398_v45  ;;  %v3501_v36 = vsel %vm1641_vm10, %v1645_v31, %v4165_v22  ;;  %1424 = vrot.lane.b32.xlu0 %v1396_v30, %s2818_s11 }
 0x1b7   : > { %4164 = vst [vmem:[#allocation58_spill] sm:$0xff] %v3495_v4  ;;  %4166 = vst [vmem:[#allocation59_spill] sm:$0xff] %v3501_v36 }
 0x1b8   : > { %v815_v16 = vpop.f32.mrb[36].mxu0 }
 0x1b9   : > { %1426 = vrot.lane.b32.xlu1 %v1395_v58, %s2818_s11  ;;  %v817_v12 = vpop.f32.mrb[37].mxu0  ;;  %v1486_v43 = vrot.slane %v815_v16, 2  ;;  %v1543_v37 = vrot.slane %v815_v16, 3 }
 0x1ba   : > { %v3505_v25 = vpop.f32.mrb[38].mxu0  ;;  %1565 = vrot.lane.b32.xlu0 %v1542_v6, %s2818_s11  ;;  %v1648_v31 = vrot.slane %v817_v12, 4 }
 0x1bb   : > { %v4088_v33 = vrot.slane %v3505_v25, 2  ;;  %v1544_v8 = vrot.slane %v3505_v25, 3  ;;  %v3510_v51 = vpop.f32.mrb[39].mxu0 }
 0x1bc   : > { %4167 = vst [vmem:[#allocation60_spill] sm:$0xff] %v3510_v51  ;;  %v4090_v22 = vrot.slane %v3510_v51, 4 }
 0x1bd   : > { %1567 = vrot.lane.b32.xlu1 %v1541_v5, %s2818_s11  ;;  %v1545_v58 = vsel %vm1536_vm9, %v1543_v37, %v1544_v8  ;;  %v3518_v30 = vsel %vm1230_vm3, %v1486_v43, %v4088_v33 }
 0x1be   : > { %v3523_v6 = vsel %vm1641_vm10, %v1648_v31, %v4090_v22  ;;  %1194 = vrot.lane.b32.xlu0 %v1165_v20, %s2818_s11 }
 0x1bf   : > { %4168 = vst [vmem:[#allocation61_spill] sm:$0xff] %v3523_v6 }
 0x1c0   : > { %v825_v16 = vpop.f32.mrb[40].mxu0 }
 0x1c1   : > { %1196 = vrot.lane.b32.xlu1 %v1164_v53, %s2818_s11  ;;  %v827_v12 = vpop.f32.mrb[41].mxu0  ;;  %v1489_v5 = vrot.slane %v825_v16, 2  ;;  %v1546_v37 = vrot.slane %v825_v16, 3 }
 0x1c2   : > { %v3527_v15 = vpop.f32.mrb[42].mxu0  ;;  %1428 = vrot.lane.b32.xlu0 %v1399_v50, %s2818_s11  ;;  %v1651_v31 = vrot.slane %v827_v12, 4 }
 0x1c3   : > { %v4091_v43 = vrot.slane %v3527_v15, 2  ;;  %v1547_v33 = vrot.slane %v3527_v15, 3  ;;  %v3532_v51 = vpop.f32.mrb[43].mxu0 }
 0x1c4   : > { %4169 = vst [vmem:[#allocation62_spill] sm:$0xff] %v3532_v51  ;;  %v4093_v22 = vrot.slane %v3532_v51, 4 }
 0x1c5   : > { %1430 = vrot.lane.b32.xlu1 %v1398_v45, %s2818_s11  ;;  %v1548_v53 = vsel %vm1536_vm9, %v1546_v37, %v1547_v33  ;;  %v3540_v20 = vsel %vm1230_vm3, %v1489_v5, %v4091_v43 }
 0x1c6   : > { %v3545_v50 = vsel %vm1641_vm10, %v1651_v31, %v4093_v22  ;;  %1569 = vrot.lane.b32.xlu0 %v1545_v58, %s2818_s11 }
 0x1c7   : > { %4170 = vst [vmem:[#allocation63_spill] sm:$0xff] %v3545_v50 }
 0x1c8   : > { %v835_v16 = vpop.f32.mrb[44].mxu0 }
 0x1c9   : > { %1571 = vrot.lane.b32.xlu1 %v1544_v8, %s2818_s11  ;;  %v837_v12 = vpop.f32.mrb[45].mxu0  ;;  %v1492_v45 = vrot.slane %v835_v16, 2  ;;  %v1549_v37 = vrot.slane %v835_v16, 3 }
 0x1ca   : > { %v3549_v6 = vpop.f32.mrb[46].mxu0  ;;  %1573 = vrot.lane.b32.xlu0 %v1548_v53, %s2818_s11  ;;  %v1654_v31 = vrot.slane %v837_v12, 4 }
 0x1cb   : > { %v4095_v5 = vrot.slane %v3549_v6, 2  ;;  %v1550_v43 = vrot.slane %v3549_v6, 3  ;;  %v3554_v51 = vpop.f32.mrb[47].mxu0 }
 0x1cc   : > { %4171 = vst [vmem:[#allocation64_spill] sm:$0xff] %v3554_v51  ;;  %v4097_v22 = vrot.slane %v3554_v51, 4 }
 0x1cd   : > { %1575 = vrot.lane.b32.xlu1 %v1547_v33, %s2818_s11  ;;  %v1551_v8 = vsel %vm1536_vm9, %v1549_v37, %v1550_v43  ;;  %v3562_v58 = vsel %vm1230_vm3, %v1492_v45, %v4095_v5 }
 0x1ce   : > { %v3567_v53 = vsel %vm1641_vm10, %v1654_v31, %v4097_v22  ;;  %1577 = vrot.lane.b32.xlu0 %v1551_v8, %s2818_s11 }
 0x1cf   : > { %4172 = vst [vmem:[#allocation65_spill] sm:$0xff] %v3567_v53 }
 0x1d0   : > { %v845_v16 = vpop.f32.mrb[48].mxu0 }
 0x1d1   : > { %1579 = vrot.lane.b32.xlu1 %v1550_v43, %s2818_s11  ;;  %v847_v12 = vpop.f32.mrb[49].mxu0  ;;  %v1495_v33 = vrot.slane %v845_v16, 2  ;;  %v1552_v37 = vrot.slane %v845_v16, 3 }
 0x1d2   : > { %v3571_v50 = vpop.f32.mrb[50].mxu0  ;;  %v1657_v51 = vrot.slane %v847_v12, 4 }
 0x1d3   : > { %4173 = vst [vmem:[#allocation66_spill] sm:$0xff] %v3571_v50  ;;  %v4100_v60 = vrot.slane %v3571_v50, 2  ;;  %v1553_v45 = vrot.slane %v3571_v50, 3  ;;  %v3575_v5 = vpop.f32.mrb[51].mxu0 }
 0x1d4   : > { %4174 = vst [vmem:[#allocation67_spill] sm:$0xff] %v3575_v5  ;;  %v4099_v31 = vrot.slane %v3575_v5, 4 }
 0x1d5   : > { %1583 = vrot.lane.b32.xlu1 %v1553_v45, %s2818_s11  ;;  %v1554_v8 = vsel %vm1536_vm9, %v1552_v37, %v1553_v45  ;;  %v3583_v43 = vsel %vm1230_vm3, %v1495_v33, %v4100_v60 }
 0x1d6   : > { %1581 = vrot.lane.b32.xlu0 %v1554_v8, %s2818_s11  ;;  %v3589_v16 = vsel %vm1641_vm10, %v1657_v51, %v4099_v31 }
 0x1d7   : > { %4175 = vst [vmem:[#allocation68_spill] sm:$0xff] %v3589_v16 }
 0x1d8   : > { %v855_v22 = vpop.f32.mrb[52].mxu0 }
 0x1d9   : > { %v857_v12 = vpop.f32.mrb[53].mxu0  ;;  %v1498_v4 = vrot.slane %v855_v22, 2  ;;  %v1555_v14 = vrot.slane %v855_v22, 3 }
 0x1da   : > { %v3591_v53 = vpop.f32.mrb[54].mxu0  ;;  %v1660_v33 = vrot.slane %v857_v12, 4 }
 0x1db   : > { %4176 = vst [vmem:[#allocation69_spill] sm:$0xff] %v3591_v53  ;;  %v1499_v37 = vrot.slane %v3591_v53, 2  ;;  %v1556_v45 = vrot.slane %v3591_v53, 3  ;;  %v3595_v36 = vpop.f32.mrb[55].mxu0 }
 0x1dc   : > { %v4104_v8 = vrot.slane %v3595_v36, 4 }
 0x1dd   : > { %1587 = vrot.lane.b32.xlu1 %v1556_v45, %s2818_s11  ;;  %v1557_v51 = vsel %vm1536_vm9, %v1555_v14, %v1556_v45  ;;  %v3603_v31 = vsel %vm1230_vm3, %v1498_v4, %v1499_v37 }
 0x1de   : > { %1585 = vrot.lane.b32.xlu0 %v1557_v51, %s2818_s11  ;;  %v3609_v22 = vsel %vm1641_vm10, %v1660_v33, %v4104_v8 }
 0x1e0   : > { %v865_v60 = vpop.f32.mrb[56].mxu0 }
 0x1e1   : > { %v867_v12 = vpop.f32.mrb[57].mxu0  ;;  %v1501_v5 = vrot.slane %v865_v60, 2  ;;  %v1558_v50 = vrot.slane %v865_v60, 3 }
 0x1e2   : > { %v3611_v16 = vpop.f32.mrb[58].mxu0  ;;  %v1663_v4 = vrot.slane %v867_v12, 4  ;;  %v4177_v12 = vrot.slane %v3158_v32, 1 }
 0x1e3   : > { %v4106_v14 = vrot.slane %v3611_v16, 2  ;;  %v1559_v45 = vrot.slane %v3611_v16, 3  ;;  %v3615_v53 = vpop.f32.mrb[59].mxu0 }
 0x1e4   : > { %v4105_v51 = vrot.slane %v3615_v53, 4 }
 0x1e5   : > { %1591 = vrot.lane.b32.xlu1 %v1559_v45, %s2818_s11  ;;  %v1560_v33 = vsel %vm1536_vm9, %v1558_v50, %v1559_v45  ;;  %v3623_v8 = vsel %vm1230_vm3, %v1501_v5, %v4106_v14  ;;  %v4178_v50 = vrot.slane %v3194_v56, 1 }
 0x1e6   : > { %1589 = vrot.lane.b32.xlu0 %v1560_v33, %s2818_s11  ;;  %v3629_v60 = vsel %vm1641_vm10, %v1663_v4, %v4105_v51  ;;  %v4179_v4 = vrot.slane %v3235_v27, 1 }
 0x1e9   : > { %990 = vrot.lane.b32.xlu1 %v4177_v12, %s2818_s11  ;;  %v4180_v12 = vrot.slane %v3188_v52, 2 }
 0x1ea   : > { %988 = vrot.lane.b32.xlu0 %v3171_v40, %s2818_s11 }
 0x1ed   : > { %994 = vrot.lane.b32.xlu1 %v4178_v50, %s2818_s11  ;;  %v4181_v50 = vrot.slane %v3424_v26, 2 }
 0x1ee   : > { %992 = vrot.lane.b32.xlu0 %v3212_v3, %s2818_s11 }
 0x1ef   : > { %v1169_v5 = vpop.permute.xlu1 %1168 }
 0x1f0   : > { %v1215_v45 = vadd.f32 %v1169_v5, %v3158_v32  ;;  %v1403_v33 = vpop.permute.xlu0 %1402  ;;  %v4182_v32 = vrot.slane %v3276_v18, 1 }
 0x1f1   : > { %998 = vrot.lane.b32.xlu1 %v4179_v4, %s2818_s11  ;;  %v1449_v40 = vadd.f32 %v1403_v33, %v3196_v57 }
 0x1f2   : > { %v1272_v51 = vadd.f32 %v4180_v12, %v1215_v45  ;;  %996 = vrot.lane.b32.xlu0 %v3252_v49, %s2818_s11  ;;  %v4183_v45 = vrot.slane %v3317_v46, 1 }
 0x1f3   : > { %v3652_v14 = vadd.f32 %v4181_v50, %v1449_v40 }
 0x1f4   : > { %v1167_v3 = vpop.permute.xlu0 %1166  ;;  %v1289_v33 = vsel %vm1288_vm13, %v1272_v51, -inf  ;;  %v4185_v51 = vrot.slane %v3359_v35, 1 }
 0x1f5   : > { %1002 = vrot.lane.b32.xlu1 %v4182_v32, %s2818_s11  ;;  %v1214_v5 = vadd.f32 %v1167_v3, %v3142_v23  ;;  %v4184_v23 = vrot.slane %v3227_v17, 2 }
 0x1f6   : > { %1000 = vrot.lane.b32.xlu0 %v3293_v54, %s2818_s11 }
 0x1f7   : > { %v1173_v52 = vpop.permute.xlu1 %1172  ;;  %v1271_v57 = vadd.f32 %v3207_v0, %v1214_v5 }
 0x1f8   : > { %v1217_v49 = vadd.f32 %v1173_v52, %v3194_v56  ;;  %v1401_v26 = vpop.permute.xlu0 %1400 }
 0x1f9   : > { %1006 = vrot.lane.b32.xlu1 %v4183_v45, %s2818_s11  ;;  %v1287_v4 = vsel %vm1052_vm14, %v1271_v57, -inf  ;;  %v1448_v54 = vadd.f32 %v1401_v26, %v3182_v48  ;;  %v4186_v48 = vrot.slane %v3464_v55, 2 }
 0x1fa   : > { %v1274_v12 = vadd.f32 %v4184_v23, %v1217_v49  ;;  %1004 = vrot.lane.b32.xlu0 %v3334_v38, %s2818_s11  ;;  %v1290_v0 = vmax.f32 %v1287_v4, %v1289_v33  ;;  %v4187_v49 = vrot.slane %v3401_v62, 1 }
 0x1fb   : > { %v1407_v40 = vpop.permute.xlu1 %1406  ;;  %v3674_v50 = vadd.f32 %v3447_v24, %v1448_v54 }
 0x1fc   : > { %v1451_v56 = vadd.f32 %v1407_v40, %v3237_v29  ;;  %v1291_v3 = vrot.slane %v1290_v0, 4  ;;  %v1171_v32 = vpop.permute.xlu0 %1170 }
 0x1fd   : > { %1010 = vrot.lane.b32.xlu1 %v4185_v51, %s2818_s11  ;;  %v1216_v17 = vadd.f32 %v1171_v32, %v3180_v47  ;;  %v1298_v47 = vsel %vm1288_vm13, %v1274_v12, -inf  ;;  %v4188_v12 = vrot.slane %v3162_v34, 1  ;;  %v1880_v51 = vld [vmem:[#allocation7 + $0x80] sm:$0xff] }
 0x1fe   : > { %1008 = vrot.lane.b32.xlu0 %v3377_v59, %s2818_s11  ;;  %v3684_v38 = vadd.f32 %v4186_v48, %v1451_v56  ;;  %v1292_v5 = vmax.f32 %v1290_v0, %v1291_v3 }
 0x1ff   : > { %v1405_v29 = vpop.permute.xlu1 %1404  ;;  %v1273_v24 = vadd.f32 %v3246_v42, %v1216_v17  ;;  %v1864_v17 = vld [vmem:[#allocation7] sm:$0xff] }
 0x200   : > { %v1450_v52 = vadd.f32 %v1405_v29, %v3220_v11  ;;  %v1175_v57 = vpop.permute.xlu0 %1174  ;;  %v1293_v42 = vrot.slane %v1292_v5, 2 }
 0x201   : > { %1014 = vrot.lane.b32.xlu1 %v4187_v49, %s2818_s11  ;;  %v1297_v26 = vsel %vm1052_vm14, %v1273_v24, -inf  ;;  %v1218_v59 = vadd.f32 %v1175_v57, %v3218_v10  ;;  %v4189_v10 = vrot.slane %v3268_v9, 2  ;;  %v1881_v9 = vld [vmem:[#allocation7 + $0x88] sm:$0xff]  ;;  %v4190_v49 = vrot.slane %v3505_v25, 2  ;;  %v1868_v25 = vld [vmem:[#allocation7 + $0x20] sm:$0xff] }
 0x202   : > { %1012 = vrot.lane.b32.xlu0 %v3418_v21, %s2818_s11  ;;  %v3697_v55 = vadd.f32 %v3490_v28, %v1450_v52  ;;  %v1299_v45 = vmax.f32 %v1297_v26, %v1298_v47  ;;  %v1294_v28 = vmax.f32 %v1292_v5, %v1293_v42  ;;  %v2402_v24 = vpack.c.bf16 %v1881_v9, %v1880_v51  ;;  %v1882_v5 = vld [vmem:[#allocation7 + $0x90] sm:$0xff]  ;;  %v1883_v52 = vld [vmem:[#allocation7 + $0x98] sm:$0xff]  ;;  %v1884_v42 = vld [vmem:[#allocation7 + $0xa0] sm:$0xff] }
 0x203   : > { %v1177_v11 = vpop.permute.xlu1 %1176  ;;  %v1275_v33 = vadd.f32 %v3287_v44, %v1218_v59  ;;  %v2406_v26 = vpack.c.bf16 %v1883_v52, %v1882_v5  ;;  %v1867_v59 = vld [vmem:[#allocation7 + $0x18] sm:$0xff]  ;;  %v4192_v52 = vrot.slane %v3527_v15, 2 }
 0x204   : > { %v1219_v4 = vadd.f32 %v1177_v11, %v3235_v27  ;;  %v1300_v23 = vrot.slane %v1299_v45, 4  ;;  %v1409_v54 = vpop.permute.xlu0 %1408  ;;  %2403 = vmatprep.subr.bf16.mxu1 %v2402_v24 }
 0x205   : > { %1018 = vrot.lane.b32.xlu1 %v4188_v12, %s2818_s11  ;;  %v1452_v21 = vadd.f32 %v1409_v54, %v3260_v2  ;;  %v1306_v44 = vsel %vm1052_vm14, %v1275_v33, -inf }
 0x206   : > { %v1276_v0 = vadd.f32 %v4189_v10, %v1219_v4  ;;  %1016 = vrot.lane.b32.xlu0 %v3176_v41, %s2818_s11  ;;  %v1301_v40 = vmax.f32 %v1299_v45, %v1300_v23  ;;  %v1865_v41 = vld [vmem:[#allocation7 + $0x8] sm:$0xff]  ;;  %v1295_v45 = vrot.slane %v1294_v28, 1 }
 0x207   : > { %v1411_v56 = vpop.permute.xlu1 %1410  ;;  %v3713_v32 = vadd.f32 %v3518_v30, %v1452_v21  ;;  %v1866_v30 = vld [vmem:[#allocation7 + $0x10] sm:$0xff]  ;;  %v1885_v23 = vld [vmem:[#allocation7 + $0xa8] sm:$0xff] }
 0x208   : > { %v1307_v27 = vsel %vm1288_vm13, %v1276_v0, -inf  ;;  %v1453_v3 = vadd.f32 %v1411_v56, %v3278_v19  ;;  %v1302_v48 = vrot.slane %v1301_v40, 2  ;;  %v1179_v29 = vpop.permute.xlu0 %1178  ;;  %v2404_v19 = vpack.c.bf16 %v1865_v41, %v1864_v17  ;;  %v1869_v10 = vld [vmem:[#allocation7 + $0x28] sm:$0xff] }
 0x209   : > { %v1308_v2 = vmax.f32 %v1306_v44, %v1307_v27  ;;  %v1220_v57 = vadd.f32 %v1179_v29, %v3258_v63  ;;  %v2408_v63 = vpack.c.bf16 %v1867_v59, %v1866_v30  ;;  %v2410_v44 = vpack.c.bf16 %v1885_v23, %v1884_v42  ;;  %v4196_v23 = vld [vmem:[#allocation35_spill] sm:$0xff] }
 0x20a   : > { %v3718_v47 = vadd.f32 %v4190_v49, %v1453_v3  ;;  %v1303_v11 = vmax.f32 %v1301_v40, %v1302_v48  ;;  %2405 = vmatpush3.bf16.msra.mxu1 %v2404_v19  ;;  %v4191_v27 = vrot.slane %v3309_v39, 2  ;;  %v1296_v51 = vmax.f32 %v1294_v28, %v1295_v45 }
 0x20b   : > { %v1309_v33 = vrot.slane %v1308_v2, 4  ;;  %v1181_v4 = vpop.permute.xlu1 %1180  ;;  %v1277_v54 = vadd.f32 %v3328_v61, %v1220_v57  ;;  %2407 = vmatprep.subr.bf16.mxu1 %v2406_v26  ;;  %v2412_v48 = vpack.c.bf16 %v1869_v10, %v1868_v25  ;;  %v4197_v10 = vld [vmem:[#allocation38_spill] sm:$0xff] }
 0x20c   : > { %v1221_v12 = vadd.f32 %v1181_v4, %v3276_v18  ;;  %v1304_v0 = vrot.slane %v1303_v11, 1  ;;  %v1413_v56 = vpop.permute.xlu0 %1412 }
 0x20d   : > { %v1310_v21 = vmax.f32 %v1308_v2, %v1309_v33  ;;  %v1454_v3 = vadd.f32 %v1413_v56, %v3301_v1  ;;  %v1315_v18 = vsel %vm1052_vm14, %v1277_v54, -inf }
 0x20e   : > { %v1278_v40 = vadd.f32 %v4191_v27, %v1221_v12  ;;  %v1305_v9 = vmax.f32 %v1303_v11, %v1304_v0  ;;  %2409 = vmatpush3.bf16.msra.mxu1 %v2408_v63  ;;  %v4194_v11 = vld [vmem:[#allocation37_spill] sm:$0xff]  ;;  %v4198_v27 = vld [vmem:[#allocation34_spill] sm:$0xff] }
 0x20f   : > { %v1311_v17 = vrot.slane %v1310_v21, 2  ;;  %v1415_v61 = vpop.permute.xlu1 %1414  ;;  %v3729_v2 = vadd.f32 %v3540_v20, %v1454_v3  ;;  %2411 = vmatprep.subr.bf16.mxu1 %v2410_v44  ;;  %v4195_v33 = vrot.slane %v4194_v11, 2  ;;  %v4199_v3 = vrot.slane %v3549_v6, 2 }
 0x210   : > { %v1316_v29 = vsel %vm1288_vm13, %v1278_v40, -inf  ;;  %v1455_v24 = vadd.f32 %v1415_v61, %v3319_v7  ;;  %v1183_v5 = vpop.permute.xlu0 %1182  ;;  %v1818_v1 = vsel %vm1779_vm4, %v1305_v9, %v1296_v51  ;;  %v4193_v7 = vld [vmem:[#allocation39_spill] sm:$0xff] }
 0x211   : > { %v1312_v41 = vmax.f32 %v1310_v21, %v1311_v17  ;;  %v1317_v39 = vmax.f32 %v1315_v18, %v1316_v29  ;;  %v1222_v28 = vadd.f32 %v1183_v5, %v3299_v13 }
 0x212   : > { %v3735_v57 = vadd.f32 %v4192_v52, %v1455_v24  ;;  %2413 = vmatpush3.bf16.msra.mxu1 %v2412_v48  ;;  %v4200_v48 = vld [vmem:[#allocation46_spill] sm:$0xff] }
 0x213   : > { %v1313_v49 = vrot.slane %v1312_v41, 1  ;;  %v1318_v19 = vrot.slane %v1317_v39, 4  ;;  %v1185_v26 = vpop.permute.xlu1 %1184  ;;  %v1279_v30 = vadd.f32 %v4193_v7, %v1222_v28  ;;  %v4203_v28 = vld [vmem:[#allocation42_spill] sm:$0xff] }
 0x214   : > { %v1223_v20 = vadd.f32 %v1185_v26, %v3317_v46  ;;  %v1417_v45 = vpop.permute.xlu0 %1416 }
 0x215   : > { %v1314_v59 = vmax.f32 %v1312_v41, %v1313_v49  ;;  %v1319_v42 = vmax.f32 %v1317_v39, %v1318_v19  ;;  %v1456_v13 = vadd.f32 %v1417_v45, %v4196_v23  ;;  %v1324_v63 = vsel %vm1052_vm14, %v1279_v30, -inf  ;;  %v4201_v39 = vld [vmem:[#allocation44_spill] sm:$0xff]  ;;  %v4204_v30 = vld [vmem:[#allocation45_spill] sm:$0xff] }
 0x216   : > { %v1280_v4 = vadd.f32 %v4195_v33, %v1223_v20  ;;  %v4202_v5 = vrot.slane %v4201_v39, 2  ;;  %v4205_v33 = vld [vmem:[#allocation66_spill] sm:$0xff] }
 0x217   : > { %v1320_v54 = vrot.slane %v1319_v42, 2  ;;  %v1419_v15 = vpop.permute.xlu1 %1418  ;;  %v1819_v12 = vsel %vm1781_vm5, %v1314_v59, %v1818_v1  ;;  %v3747_v46 = vadd.f32 %v3562_v58, %v1456_v13 }
 0x218   : > { %v1325_v25 = vsel %vm1288_vm13, %v1280_v4, -inf  ;;  %v1457_v0 = vadd.f32 %v1419_v15, %v4197_v10  ;;  %v1187_v44 = vpop.permute.xlu0 %1186  ;;  %v4206_v4 = vrot.slane %v4205_v33, 2 }
 0x219   : > { %v1321_v21 = vmax.f32 %v1319_v42, %v1320_v54  ;;  %v1326_v56 = vmax.f32 %v1324_v63, %v1325_v25  ;;  %v1224_v40 = vadd.f32 %v1187_v44, %v4198_v27  ;;  %v4210_v27 = vld [vmem:[#allocation41_spill] sm:$0xff] }
 0x21a   : > { %v3752_v51 = vadd.f32 %v4199_v3, %v1457_v0 }
 0x21b   : > { %v1322_v9 = vrot.slane %v1321_v21, 1  ;;  %v1327_v17 = vrot.slane %v1326_v56, 4  ;;  %v1189_v61 = vpop.permute.xlu1 %1188  ;;  %v1281_v18 = vadd.f32 %v4200_v48, %v1224_v40  ;;  %v4211_v48 = vld [vmem:[#allocation51_spill] sm:$0xff] }
 0x21c   : > { %v1225_v29 = vadd.f32 %v1189_v61, %v3359_v35  ;;  %v1421_v58 = vpop.permute.xlu0 %1420 }
 0x21d   : > { %v1323_v24 = vmax.f32 %v1321_v21, %v1322_v9  ;;  %v1328_v41 = vmax.f32 %v1326_v56, %v1327_v17  ;;  %v1458_v52 = vadd.f32 %v1421_v58, %v4203_v28  ;;  %v1333_v26 = vsel %vm1052_vm14, %v1281_v18, -inf  ;;  %v4208_v21 = vld [vmem:[#allocation49_spill] sm:$0xff]  ;;  %v4212_v58 = vld [vmem:[#allocation48_spill] sm:$0xff] }
 0x21e   : > { %v1282_v1 = vadd.f32 %v4202_v5, %v1225_v29  ;;  %v4209_v56 = vrot.slane %v4208_v21, 4  ;;  %v4213_v39 = vrot.slane %v4212_v58, 2 }
 0x21f   : > { %v1329_v49 = vrot.slane %v1328_v41, 2  ;;  %v1423_v19 = vpop.permute.xlu1 %1422  ;;  %v1820_v6 = vsel %vm1783_vm6, %v1323_v24, %v1819_v12  ;;  %v3764_v35 = vadd.f32 %v3583_v43, %v1458_v52  ;;  %v4207_v12 = vld [vmem:[#allocation52_spill] sm:$0xff] }
 0x220   : > { %v1334_v7 = vsel %vm1288_vm13, %v1282_v1, -inf  ;;  %v1459_v20 = vadd.f32 %v1423_v19, %v4204_v30  ;;  %v1562_v45 = vpop.permute.xlu0 %1561  ;;  %v4214_v1 = vld [vmem:[#allocation47_spill] sm:$0xff] }
 0x221   : > { %v1330_v59 = vmax.f32 %v1328_v41, %v1329_v49  ;;  %v1335_v42 = vmax.f32 %v1333_v26, %v1334_v7  ;;  %v1609_v11 = vadd.f32 %v1562_v45, %v3674_v50  ;;  %v4215_v26 = vld [vmem:[#allocation50_spill] sm:$0xff] }
 0x222   : > { %v3769_v23 = vadd.f32 %v4206_v4, %v1459_v20 }
 0x223   : > { %v1331_v13 = vrot.slane %v1330_v59, 1  ;;  %v1336_v54 = vrot.slane %v1335_v42, 4  ;;  %v1564_v15 = vpop.permute.xlu1 %1563  ;;  %v1682_v63 = vadd.f32 %v4207_v12, %v1609_v11 }
 0x224   : > { %v1610_v25 = vadd.f32 %v1564_v15, %v3652_v14  ;;  %v1191_v43 = vpop.permute.xlu0 %1190  ;;  %v4217_v15 = vld [vmem:[#allocation59_spill] sm:$0xff] }
 0x225   : > { %v1332_v10 = vmax.f32 %v1330_v59, %v1331_v13  ;;  %v1337_v0 = vmax.f32 %v1335_v42, %v1336_v54  ;;  %v1226_v50 = vadd.f32 %v1191_v43, %v4210_v27  ;;  %v1698_v17 = vsel %vm874_vm1, %v1682_v63, -inf }
 0x226   : > { %v1683_v44 = vadd.f32 %v4209_v56, %v1610_v25  ;;  %v4220_v56 = vld [vmem:[#allocation22_spill] sm:$0xff] }
 0x227   : > { %v1338_v40 = vrot.slane %v1337_v0, 2  ;;  %v1193_v3 = vpop.permute.xlu1 %1192  ;;  %v1821_v9 = vsel %vm1785_vm7, %v1332_v10, %v1820_v6  ;;  %v1283_v18 = vadd.f32 %v4211_v48, %v1226_v50 }
 0x228   : > { %v1700_v61 = vsel %vm1699_vm15, %v1683_v44, -inf  ;;  %v1227_v14 = vadd.f32 %v1193_v3, %v3401_v62  ;;  %v1425_v41 = vpop.permute.xlu0 %1424  ;;  %v4221_v3 = vld [vmem:[#allocation58_spill] sm:$0xff] }
 0x229   : > { %v1339_v29 = vmax.f32 %v1337_v0, %v1338_v40  ;;  %v1701_v24 = vmax.f32 %v1698_v17, %v1700_v61  ;;  %v1460_v28 = vadd.f32 %v1425_v41, %v4214_v1  ;;  %v1342_v19 = vsel %vm1052_vm14, %v1283_v18, -inf  ;;  %v4218_v0 = vld [vmem:[#allocation55_spill] sm:$0xff]  ;;  %v4224_v41 = vld [vmem:[#allocation53_spill] sm:$0xff] }
 0x22a   : > { %v1284_v5 = vadd.f32 %v4213_v39, %v1227_v14  ;;  %v4219_v43 = vrot.slane %v4218_v0, 4  ;;  %v4222_v14 = vld [vmem:[#allocation54_spill] sm:$0xff] }
 0x22b   : > { %v1340_v52 = vrot.slane %v1339_v29, 1  ;;  %v1427_v49 = vpop.permute.xlu1 %1426  ;;  %v3788_v30 = vadd.f32 %v3603_v31, %v1460_v28  ;;  %v1702_v62 = vrot.slane %v1701_v24, 4  ;;  %v1888_v0 = vld [vmem:[#allocation7 + $0xc0] sm:$0xff] }
 0x22c   : > { %v1343_v6 = vsel %vm1288_vm13, %v1284_v5, -inf  ;;  %v1461_v7 = vadd.f32 %v1427_v49, %v4215_v26  ;;  %v1566_v59 = vpop.permute.xlu0 %1565 }
 0x22d   : > { %v1344_v20 = vmax.f32 %v1342_v19, %v1343_v6  ;;  %v1341_v42 = vmax.f32 %v1339_v29, %v1340_v52  ;;  %v1611_v45 = vadd.f32 %v1566_v59, %v3697_v55  ;;  %v1703_v31 = vmax.f32 %v1701_v24, %v1702_v62 }
 0x22e   : > { %v3793_v33 = vadd.f32 %v1499_v37, %v1461_v7  ;;  %v1850_v37 = vlaneseq  ;;  %v4223_v29 = vrot.slane %v4222_v14, 2 }
 0x22f   : > { %v1345_v4 = vrot.slane %v1344_v20, 4  ;;  %v1568_v13 = vpop.permute.xlu1 %1567  ;;  %v1822_v54 = vsel %vm1787_vm8, %v1341_v42, %v1821_v9  ;;  %v1684_v12 = vadd.f32 %v4217_v15, %v1611_v45  ;;  %v4226_v45 = vrot.slane %v3611_v16, 2  ;;  %v1870_v15 = vld [vmem:[#allocation7 + $0x30] sm:$0xff]  ;;  %v1871_v16 = vld [vmem:[#allocation7 + $0x38] sm:$0xff] }
 0x230   : > { %v1612_v63 = vadd.f32 %v1568_v13, %v3684_v38  ;;  %v1195_v10 = vpop.permute.xlu0 %1194  ;;  %v1704_v38 = vrot.slane %v1703_v31, 2  ;;  %v3809_v28 = vshrl.u32 %v1850_v37, 7  ;;  %v1887_v13 = vld [vmem:[#allocation7 + $0xb8] sm:$0xff] }
 0x231   : > { %v1346_v25 = vmax.f32 %v1344_v20, %v1345_v4  ;;  %v1228_v55 = vadd.f32 %v1195_v10, %v4220_v56  ;;  %v1708_v50 = vsel %vm874_vm1, %v1684_v12, -inf  ;;  %v1886_v4 = vld [vmem:[#allocation7 + $0xb0] sm:$0xff]  ;;  %v3825_v12 = vld [vmem:[%s4027_s2] sm:$0x3] }
 0x232   : > { %v1685_v21 = vadd.f32 %v4219_v43, %v1612_v63  ;;  %v1705_v26 = vmax.f32 %v1703_v31, %v1704_v38  ;;  %v1889_v43 = vld [vmem:[#allocation7 + $0xc8] sm:$0xff] }
 0x233   : > { %v1347_v44 = vrot.slane %v1346_v25, 2  ;;  %v1197_v27 = vpop.permute.xlu1 %1196  ;;  %v1285_v9 = vadd.f32 %v4221_v3, %v1228_v55  ;;  %v1890_v3 = vld [vmem:[#allocation7 + $0xd0] sm:$0xff] }
 0x234   : > { %v1709_v40 = vsel %vm1699_vm15, %v1685_v21, -inf  ;;  %v1229_v17 = vadd.f32 %v1197_v27, %v3162_v34  ;;  %v1429_v18 = vpop.permute.xlu0 %1428  ;;  %v4225_v34 = vld [vmem:[#allocation56_spill] sm:$0xff]  ;;  %v4227_v21 = vld [vmem:[#allocation61_spill] sm:$0xff]  ;;  %v2418_v27 = vpack.c.bf16 %v1889_v43, %v1888_v0 }
 0x235   : > { %v1348_v61 = vmax.f32 %v1346_v25, %v1347_v44  ;;  %v1710_v48 = vmax.f32 %v1708_v50, %v1709_v40  ;;  %v1462_v58 = vadd.f32 %v1429_v18, %v4224_v41  ;;  %v1351_v52 = vsel %vm1052_vm14, %v1285_v9, -inf  ;;  %v1872_v50 = vld [vmem:[#allocation7 + $0x40] sm:$0xff]  ;;  %v1873_v40 = vld [vmem:[#allocation7 + $0x48] sm:$0xff]  ;;  %v4228_v18 = vld [vmem:[#allocation60_spill] sm:$0xff] }
 0x236   : > { %v1286_v24 = vadd.f32 %v4223_v29, %v1229_v17  ;;  %v2416_v44 = vpack.c.bf16 %v1871_v16, %v1870_v15  ;;  %v1706_v9 = vrot.slane %v1705_v26, 1  ;;  %v4229_v14 = vrot.slane %v4228_v18, 4  ;;  %v4231_v15 = vld [vmem:[#allocation62_spill] sm:$0xff] }
 0x237   : > { %v1711_v39 = vrot.slane %v1710_v48, 4  ;;  %v1431_v5 = vpop.permute.xlu1 %1430  ;;  %v1349_v1 = vrot.slane %v1348_v61, 1  ;;  %v3815_v6 = vadd.f32 %v3623_v8, %v1462_v58  ;;  %v1856_v8 = vsub.s32 1, %v3809_v28 }
 0x238   : > { %v1352_v49 = vsel %vm1288_vm13, %v1286_v24, -inf  ;;  %v1463_v19 = vadd.f32 %v1431_v5, %v4225_v34  ;;  %v1570_v20 = vpop.permute.xlu0 %1569 }
 0x239   : > { %v1712_v7 = vmax.f32 %v1710_v48, %v1711_v39  ;;  %v1353_v62 = vmax.f32 %v1351_v52, %v1352_v49  ;;  %v1350_v59 = vmax.f32 %v1348_v61, %v1349_v1  ;;  %v1613_v42 = vadd.f32 %v1570_v20, %v3713_v32  ;;  %v1874_v1 = vld [vmem:[#allocation7 + $0x50] sm:$0xff]  ;;  %v1875_v52 = vld [vmem:[#allocation7 + $0x58] sm:$0xff]  ;;  %v1892_v20 = vld [vmem:[#allocation7 + $0xe0] sm:$0xff] }
 0x23a   : > { %v3820_v11 = vadd.f32 %v4226_v45, %v1463_v19  ;;  %v2414_v32 = vpack.c.bf16 %v1887_v13, %v1886_v4  ;;  %v3834_v48 = vrot.slane %v3825_v12, %v1856_v8  ;;  %v4230_v19 = vld [vmem:[#allocation63_spill] sm:$0xff]  ;;  %v4232_v8 = vrot.slane %v4231_v15, 4 }
 0x23b   : > { %v1713_v63 = vrot.slane %v1712_v7, 2  ;;  %v1354_v31 = vrot.slane %v1353_v62, 4  ;;  %v1572_v25 = vpop.permute.xlu1 %1571  ;;  %v3829_v10 = vsel %vm1789_vm11, %v1350_v59, %v1822_v54  ;;  %v1686_v56 = vadd.f32 %v4227_v21, %v1613_v42  ;;  %v1891_v54 = vld [vmem:[#allocation7 + $0xd8] sm:$0xff]  ;;  %v1893_v59 = vld [vmem:[#allocation7 + $0xe8] sm:$0xff]  ;;  %v1876_v21 = vld [vmem:[#allocation7 + $0x60] sm:$0xff] }
 0x23c   : > { %v1614_v55 = vadd.f32 %v1572_v25, %v3718_v47  ;;  %v1574_v61 = vpop.permute.xlu0 %1573  ;;  %2415 = vmatprep.subr.bf16.mxu1 %v2414_v32  ;;  %v2420_v47 = vpack.c.bf16 %v1873_v40, %v1872_v50  ;;  %v2422_v5 = vpack.c.bf16 %v1891_v54, %v1890_v3  ;;  %v2424_v25 = vpack.c.bf16 %v1875_v52, %v1874_v1  ;;  %v1895_v40 = vld [vmem:[#allocation7 + $0xf8] sm:$0xff] }
 0x23d   : > { %v1714_v17 = vmax.f32 %v1712_v7, %v1713_v63  ;;  %v1355_v38 = vmax.f32 %v1353_v62, %v1354_v31  ;;  %v1615_v24 = vadd.f32 %v1574_v61, %v3729_v2  ;;  %2417 = vmatpush3.bf16.msra.mxu1 %v2416_v44  ;;  %v1717_v49 = vsel %vm874_vm1, %v1686_v56, -inf  ;;  %v4233_v44 = vld [vmem:[#allocation65_spill] sm:$0xff] }
 0x23e   : > { %v1687_v29 = vadd.f32 %v4229_v14, %v1614_v55  ;;  %2419 = vmatprep.subr.bf16.mxu1 %v2418_v27  ;;  %v1707_v2 = vmax.f32 %v1705_v26, %v1706_v9  ;;  %v1877_v26 = vld [vmem:[#allocation7 + $0x68] sm:$0xff] }
 0x23f   : > { %v1715_v41 = vrot.slane %v1714_v17, 1  ;;  %v1356_v58 = vrot.slane %v1355_v38, 2  ;;  %v1576_v39 = vpop.permute.xlu1 %1575  ;;  %v1688_v7 = vadd.f32 %v4230_v19, %v1615_v24  ;;  %v2428_v18 = vpack.c.bf16 %v1877_v26, %v1876_v21 }
 0x240   : > { %v1718_v34 = vsel %vm1699_vm15, %v1687_v29, -inf  ;;  %v1616_v62 = vadd.f32 %v1576_v39, %v3735_v57  ;;  %v1578_v4 = vpop.permute.xlu0 %1577  ;;  %v2426_v57 = vpack.c.bf16 %v1893_v59, %v1892_v20 }
 0x241   : > { %v1716_v42 = vmax.f32 %v1714_v17, %v1715_v41  ;;  %v1719_v45 = vmax.f32 %v1717_v49, %v1718_v34  ;;  %v1357_v13 = vmax.f32 %v1355_v38, %v1356_v58  ;;  %v1617_v31 = vadd.f32 %v1578_v4, %v3747_v46  ;;  %2421 = vmatpush3.bf16.msra.mxu1 %v2420_v47  ;;  %v1894_v46 = vld [vmem:[#allocation7 + $0xf0] sm:$0xff] }
 0x242   : > { %v1689_v63 = vadd.f32 %v4232_v8, %v1616_v62  ;;  %2423 = vmatprep.subr.bf16.mxu1 %v2422_v5  ;;  %v1726_v56 = vsel %vm874_vm1, %v1688_v7, -inf  ;;  %v4234_v38 = vld [vmem:[#allocation64_spill] sm:$0xff]  ;;  %v2430_v41 = vpack.c.bf16 %v1895_v40, %v1894_v46  ;;  %v4236_v62 = vld [vmem:[#allocation67_spill] sm:$0xff] }
 0x243   : > { %v1720_v32 = vrot.slane %v1719_v45, 4  ;;  %v1580_v16 = vpop.permute.xlu1 %1579  ;;  %v1358_v0 = vrot.slane %v1357_v13, 1  ;;  %v1836_v43 = vsel %vm1779_vm4, %v1716_v42, %v1707_v2  ;;  %v1690_v27 = vadd.f32 %v4233_v44, %v1617_v31  ;;  %v1878_v58 = vld [vmem:[#allocation7 + $0x70] sm:$0xff] }
 0x244   : > { %v1727_v55 = vsel %vm1699_vm15, %v1689_v63, -inf  ;;  %v1618_v50 = vadd.f32 %v1580_v16, %v3752_v51  ;;  %v4235_v61 = vrot.slane %v4234_v38, 4  ;;  %v1879_v51 = vld [vmem:[#allocation7 + $0x78] sm:$0xff]  ;;  %v4238_v4 = vld [vmem:[#allocation68_spill] sm:$0xff] }
 0x245   : > { %v1721_v3 = vmax.f32 %v1719_v45, %v1720_v32  ;;  %v1728_v9 = vmax.f32 %v1726_v56, %v1727_v55  ;;  %v1359_v17 = vmax.f32 %v1357_v13, %v1358_v0  ;;  %2425 = vmatpush3.bf16.msra.mxu1 %v2424_v25  ;;  %v1735_v39 = vsel %vm874_vm1, %v1690_v27, -inf }
 0x246   : > { %v1691_v54 = vadd.f32 %v4235_v61, %v1618_v50  ;;  %2427 = vmatprep.subr.bf16.mxu1 %v2426_v57  ;;  %v2432_v59 = vpack.c.bf16 %v1879_v51, %v1878_v58  ;;  %v4239_v50 = vrot.slane %v3595_v36, 4 }
 0x247   : > { %v1722_v14 = vrot.slane %v1721_v3, 2  ;;  %v1729_v29 = vrot.slane %v1728_v9, 4  ;;  %v1584_v24 = vpop.permute.xlu1 %1583  ;;  %v1824_v47 = vsel %vm1791_vm12, %v1359_v17, %v3829_v10  ;;  %v4237_v10 = vrot.slane %v4236_v62, 4 }
 0x248   : > { %v1736_v5 = vsel %vm1699_vm15, %v1691_v54, -inf  ;;  %v1620_v1 = vadd.f32 %v1584_v24, %v3769_v23  ;;  %v1582_v52 = vpop.permute.xlu0 %1581  ;;  %1825 = vrot.lane.b32.xlu0 %v1824_v47, %s2818_s11 }
 0x249   : > { %v1723_v49 = vmax.f32 %v1721_v3, %v1722_v14  ;;  %v1730_v34 = vmax.f32 %v1728_v9, %v1729_v29  ;;  %v1737_v19 = vmax.f32 %v1735_v39, %v1736_v5  ;;  %v1619_v7 = vadd.f32 %v1582_v52, %v3764_v35  ;;  %2429 = vmatpush3.bf16.msra.mxu1 %v2428_v18 }
 0x24a   : > { %v1693_v20 = vadd.f32 %v4237_v10, %v1620_v1  ;;  %2431 = vmatprep.subr.bf16.mxu1 %v2430_v41  ;;  %v4240_v41 = vrot.slane %v3615_v53, 4 }
 0x24b   : > { %v1724_v2 = vrot.slane %v1723_v49, 1  ;;  %v1731_v42 = vrot.slane %v1730_v34, 2  ;;  %v1738_v45 = vrot.slane %v1737_v19, 4  ;;  %v1692_v13 = vadd.f32 %v4238_v4, %v1619_v7 }
 0x24c   : > { %v1745_v23 = vsel %vm1699_vm15, %v1693_v20, -inf }
 0x24d   : > { %v1725_v15 = vmax.f32 %v1723_v49, %v1724_v2  ;;  %v1732_v8 = vmax.f32 %v1730_v34, %v1731_v42  ;;  %v1739_v63 = vmax.f32 %v1737_v19, %v1738_v45  ;;  %v1744_v31 = vsel %vm874_vm1, %v1692_v13, -inf  ;;  %2433 = vmatpush3.bf16.msra.mxu1 %v2432_v59  ;;  %v4241_v49 = vld [vmem:[#allocation23_spill] sm:$0xff]  ;;  %v4243_v45 = vld [vmem:[#allocation26_spill] sm:$0xff] }
 0x24e   : > { %v1746_v25 = vmax.f32 %v1744_v31, %v1745_v23 }
 0x24f   : > { %v1733_v35 = vrot.slane %v1732_v8, 1  ;;  %v1740_v32 = vrot.slane %v1739_v63, 2  ;;  %v1588_v16 = vpop.permute.xlu1 %1587  ;;  %v1837_v0 = vsel %vm1781_vm5, %v1725_v15, %v1836_v43  ;;  %v4244_v15 = vld [vmem:[#allocation25_spill] sm:$0xff] }
 0x250   : > { %v1747_v57 = vrot.slane %v1746_v25, 4  ;;  %v1622_v21 = vadd.f32 %v1588_v16, %v3793_v33  ;;  %v1586_v26 = vpop.permute.xlu0 %1585 }
 0x251   : > { %v1734_v56 = vmax.f32 %v1732_v8, %v1733_v35  ;;  %v1741_v55 = vmax.f32 %v1739_v63, %v1740_v32  ;;  %v1621_v44 = vadd.f32 %v1586_v26, %v3788_v30  ;;  %v4245_v26 = vld [vmem:[#allocation28_spill] sm:$0xff] }
 0x252   : > { %v1748_v27 = vmax.f32 %v1746_v25, %v1747_v57  ;;  %v1695_v46 = vadd.f32 %v4239_v50, %v1622_v21 }
 0x253   : > { %v1742_v40 = vrot.slane %v1741_v55, 1  ;;  %v1694_v3 = vadd.f32 %v3609_v22, %v1621_v44  ;;  %v1838_v9 = vsel %vm1783_vm6, %v1734_v56, %v1837_v0  ;;  %v4246_v44 = vld [vmem:[#allocation27_spill] sm:$0xff] }
 0x254   : > { %v1749_v17 = vrot.slane %v1748_v27, 2  ;;  %v1754_v43 = vsel %vm1699_vm15, %v1695_v46, -inf }
 0x255   : > { %v1743_v38 = vmax.f32 %v1741_v55, %v1742_v40  ;;  %v1753_v33 = vsel %vm874_vm1, %v1694_v3, -inf }
 0x256   : > { %v1750_v61 = vmax.f32 %v1748_v27, %v1749_v17  ;;  %v1755_v54 = vmax.f32 %v1753_v33, %v1754_v43  ;;  %v2819_v17 = vmov 0.0|0.0  }
 0x257   : > { %v1592_v18 = vpop.permute.xlu1 %1591  ;;  %v1839_v30 = vsel %vm1785_vm7, %v1743_v38, %v1838_v9  ;;  %2434 = vmatprep.subr.bf16.mxu1 %v2819_v17 }
 0x258   : > { %v1751_v14 = vrot.slane %v1750_v61, 1  ;;  %v1756_v29 = vrot.slane %v1755_v54, 4  ;;  %v1624_v36 = vadd.f32 %v1592_v18, %v3820_v11  ;;  %v1590_v24 = vpop.permute.xlu0 %1589  ;;  %v4247_v18 = vld [vmem:[#allocation30_spill] sm:$0xff] }
 0x259   : > { %v1623_v22 = vadd.f32 %v1590_v24, %v3815_v6  ;;  %v4242_v6 = vld [vmem:[#allocation20_spill] sm:$0xff] }
 0x25a   : > { %v1757_v47 = vmax.f32 %v1755_v54, %v1756_v29  ;;  %v1697_v58 = vadd.f32 %v4240_v41, %v1624_v36  ;;  %v1752_v51 = vmax.f32 %v1750_v61, %v1751_v14  ;;  %v4248_v29 = vld [vmem:[#allocation29_spill] sm:$0xff] }
 0x25b   : > { %v1696_v39 = vadd.f32 %v3629_v60, %v1623_v22  ;;  %v991_v5 = vpop.permute.xlu1 %990 }
 0x25c   : > { %v1758_v1 = vrot.slane %v1757_v47, 2  ;;  %v1763_v52 = vsel %vm1699_vm15, %v1697_v58, -inf  ;;  %v1037_v34 = vadd.f32 %v991_v5, %v4241_v49  ;;  %v989_v19 = vpop.permute.xlu0 %988  ;;  %v1840_v11 = vsel %vm1787_vm8, %v1752_v51, %v1839_v30 }
 0x25d   : > { %v1762_v7 = vsel %vm874_vm1, %v1696_v39, -inf  ;;  %v1036_v62 = vadd.f32 %v989_v19, %v4242_v6  ;;  %v4249_v19 = vld [vmem:[#allocation32_spill] sm:$0xff] }
 0x25e   : > { %v1759_v10 = vmax.f32 %v1757_v47, %v1758_v1  ;;  %v1764_v53 = vmax.f32 %v1762_v7, %v1763_v52  ;;  %v1055_v20 = vsel %vm1054_vm0, %v1037_v34, -inf  ;;  %v4250_v7 = vld [vmem:[#allocation31_spill] sm:$0xff] }
 0x25f   : > { %v1053_v60 = vsel %vm1052_vm14, %v1036_v62, -inf  ;;  %v995_v59 = vpop.permute.xlu1 %994 }
 0x260   : > { %v1765_v2 = vrot.slane %v1764_v53, 4  ;;  %v1056_v42 = vmax.f32 %v1053_v60, %v1055_v20  ;;  %v1039_v4 = vadd.f32 %v995_v59, %v4243_v45  ;;  %v993_v13 = vpop.permute.xlu0 %992  ;;  %v1760_v23 = vrot.slane %v1759_v10, 1 }
 0x261   : > { %v1038_v8 = vadd.f32 %v993_v13, %v4244_v15 }
 0x262   : > { %v1766_v63 = vmax.f32 %v1764_v53, %v1765_v2  ;;  %v1057_v31 = vrot.slane %v1056_v42, 4  ;;  %v1064_v25 = vsel %vm1054_vm0, %v1039_v4, -inf  ;;  %v1761_v35 = vmax.f32 %v1759_v10, %v1760_v23 }
 0x263   : > { %v1063_v32 = vsel %vm1052_vm14, %v1038_v8, -inf  ;;  %v999_v16 = vpop.permute.xlu1 %998  ;;  %v4251_v8 = vld [vmem:[#allocation36_spill] sm:$0xff] }
 0x264   : > { %v1767_v0 = vrot.slane %v1766_v63, 2  ;;  %v1058_v57 = vmax.f32 %v1056_v42, %v1057_v31  ;;  %v1065_v21 = vmax.f32 %v1063_v32, %v1064_v25  ;;  %v1041_v56 = vadd.f32 %v999_v16, %v4245_v26  ;;  %v997_v55 = vpop.permute.xlu0 %996  ;;  %v4252_v31 = vld [vmem:[#allocation33_spill] sm:$0xff] }
 0x265   : > { %v1040_v27 = vadd.f32 %v997_v55, %v4246_v44  ;;  %v1841_v50 = vsel %vm1789_vm11, %v1761_v35, %v1840_v11 }
 0x266   : > { %v1059_v46 = vrot.slane %v1058_v57, 2  ;;  %v1066_v40 = vrot.slane %v1065_v21, 4  ;;  %v1073_v3 = vsel %vm1054_vm0, %v1041_v56, -inf  ;;  %v1768_v9 = vmax.f32 %v1766_v63, %v1767_v0 }
 0x267   : > { %v1072_v43 = vsel %vm1052_vm14, %v1040_v27, -inf  ;;  %v1003_v38 = vpop.permute.xlu1 %1002 }
 0x268   : > { %v1060_v33 = vmax.f32 %v1058_v57, %v1059_v46  ;;  %v1067_v61 = vmax.f32 %v1065_v21, %v1066_v40  ;;  %v1074_v54 = vmax.f32 %v1072_v43, %v1073_v3  ;;  %v1043_v30 = vadd.f32 %v1003_v38, %v4247_v18  ;;  %v1001_v14 = vpop.permute.xlu0 %1000  ;;  %v4253_v46 = vld [vmem:[#allocation43_spill] sm:$0xff]  ;;  %v4254_v3 = vld [vmem:[#allocation40_spill] sm:$0xff] }
 0x269   : > { %v1042_v36 = vadd.f32 %v1001_v14, %v4248_v29  ;;  %v1769_v24 = vrot.slane %v1768_v9, 1 }
 0x26a   : > { %v1068_v22 = vrot.slane %v1067_v61, 2  ;;  %v1075_v47 = vrot.slane %v1074_v54, 4  ;;  %v1082_v41 = vsel %vm1054_vm0, %v1043_v30, -inf  ;;  %v1061_v58 = vrot.slane %v1060_v33, 1 }
 0x26b   : > { %v1081_v51 = vsel %vm1052_vm14, %v1042_v36, -inf  ;;  %v1007_v39 = vpop.permute.xlu1 %1006  ;;  %v1770_v5 = vmax.f32 %v1768_v9, %v1769_v24 }
 0x26c   : > { %v1069_v1 = vmax.f32 %v1067_v61, %v1068_v22  ;;  %v1076_v52 = vmax.f32 %v1074_v54, %v1075_v47  ;;  %v1083_v49 = vmax.f32 %v1081_v51, %v1082_v41  ;;  %v1005_v34 = vpop.permute.xlu0 %1004  ;;  %v1045_v11 = vadd.f32 %v1007_v39, %v4249_v19  ;;  %v4255_v47 = vld [vmem:[#allocation24_spill] sm:$0xff] }
 0x26d   : > { %v1044_v6 = vadd.f32 %v1005_v34, %v4250_v7  ;;  %v1842_v62 = vsel %vm1791_vm12, %v1770_v5, %v1841_v50  ;;  %v1062_v60 = vmax.f32 %v1060_v33, %v1061_v58  ;;  %v4256_v58 = vld [vmem:[#allocation21_spill] sm:$0xff] }
 0x26e   : > { %v1070_v10 = vrot.slane %v1069_v1, 1  ;;  %v1077_v53 = vrot.slane %v1076_v52, 2  ;;  %v1084_v20 = vrot.slane %v1083_v49, 4  ;;  %1843 = vrot.lane.b32.xlu1 %v1842_v62, %s2818_s11  ;;  %v1091_v59 = vsel %vm1054_vm0, %v1045_v11, -inf  ;;  %s2703_s11 = sshll.u32 %s2822_s25, 4  ;;  %s2704_s11 = int_to_ptr.vmem [resolvable:$false] %s2703_s11 }
 0x26f   : > { %v1090_v2 = vsel %vm1052_vm14, %v1044_v6, -inf  ;;  %v1011_v42 = vpop.permute.xlu1 %1010  ;;  %s2705_s13 = scalar_lea.vmem %s2704_s11, 512  ;;  %p2706_p12 = scmp.lt.s32.totalorder %s2112_s10, %s2704_s11 }
 0x270   : > { %v1071_v45 = vmax.f32 %v1069_v1, %v1070_v10  ;;  %v1078_v4 = vmax.f32 %v1076_v52, %v1077_v53  ;;  %v1085_v13 = vmax.f32 %v1083_v49, %v1084_v20  ;;  %v1092_v23 = vmax.f32 %v1090_v2, %v1091_v59  ;;  %v1009_v15 = vpop.permute.xlu0 %1008  ;;  %p2707_p2 = scmp.lt.s32.totalorder %s2705_s13, %s2699_s23 }
 0x271   : > { %v1047_v63 = vadd.f32 %v1011_v42, %v4251_v8  ;;  %v1046_v25 = vadd.f32 %v1009_v15, %v4252_v31  ;;  %v1852_v15 = vsub.s32 0, %v3809_v28  ;;  %v1975_v28 = vld [vmem:[#allocation8 + $0x8] sm:$0xff] }
 0x272   : > { %v1802_v35 = vsel %vm1779_vm4, %v1071_v45, %v1062_v60  ;;  %v1079_v32 = vrot.slane %v1078_v4, 1  ;;  %v1086_v16 = vrot.slane %v1085_v13, 2  ;;  %v1093_v0 = vrot.slane %v1092_v23, 4  ;;  %p2708_p1 = por %p2707_p2, %p2706_p12 }
 0x273   : > { %v1100_v57 = vsel %vm1054_vm0, %v1047_v63, -inf  ;;  %v1099_v21 = vsel %vm1052_vm14, %v1046_v25, -inf  ;;  %v1015_v26 = vpop.permute.xlu1 %1014  ;;  %v1853_v25 = vrot.slane %v3825_v12, %v1852_v15 }
 0x274   : > { %v1080_v56 = vmax.f32 %v1078_v4, %v1079_v32  ;;  %v1087_v55 = vmax.f32 %v1085_v13, %v1086_v16  ;;  %v1094_v44 = vmax.f32 %v1092_v23, %v1093_v0  ;;  %v1101_v27 = vmax.f32 %v1099_v21, %v1100_v57  ;;  %v1013_v50 = vpop.permute.xlu0 %1012  ;;  %v4257_v32 = vld [vmem:[#allocation57_spill] sm:$0xff]  ;;  %v1974_v57 = vld [vmem:[#allocation8] sm:$0xff]  ;;  %p2709_p4 = pnand %p2708_p1, %p2702_p7 }
 0x275   : > { %v1049_v40 = vadd.f32 %v1015_v26, %v4253_v46  ;;  %v1048_v9 = vadd.f32 %v1013_v50, %v4254_v3  ;;  %v2435_v12 = vpack.c.bf16 %v1975_v28, %v1974_v57  ;;  %v1978_v46 = vld [vmem:[#allocation8 + $0x20] sm:$0xff] }
 0x276   : > { %v1803_v43 = vsel %vm1781_vm5, %v1080_v56, %v1802_v35  ;;  %v1088_v38 = vrot.slane %v1087_v55, 1  ;;  %v1095_v33 = vrot.slane %v1094_v44, 2  ;;  %v1102_v61 = vrot.slane %v1101_v27, 4 }
 0x277   : > { %v1109_v54 = vsel %vm1054_vm0, %v1049_v40, -inf  ;;  %v1108_v18 = vsel %vm1052_vm14, %v1048_v9, -inf  ;;  %v1019_v30 = vpop.permute.xlu1 %1018  ;;  %v1979_v40 = vld [vmem:[#allocation8 + $0x28] sm:$0xff]  ;;  %v1980_v9 = vld [vmem:[#allocation8 + $0x30] sm:$0xff] }
 0x278   : > { %v1089_v14 = vmax.f32 %v1087_v55, %v1088_v38  ;;  %v1096_v29 = vmax.f32 %v1094_v44, %v1095_v33  ;;  %v1103_v36 = vmax.f32 %v1101_v27, %v1102_v61  ;;  %v1110_v24 = vmax.f32 %v1108_v18, %v1109_v54  ;;  %v1017_v22 = vpop.permute.xlu0 %1016  ;;  %v1976_v44 = vld [vmem:[#allocation8 + $0x10] sm:$0xff]  ;;  %v1977_v27 = vld [vmem:[#allocation8 + $0x18] sm:$0xff]  ;;  %v1982_v38 = vld [vmem:[#allocation8 + $0x40] sm:$0xff] }
 0x279   : > { %v1051_v41 = vadd.f32 %v1019_v30, %v4255_v47  ;;  %v1050_v51 = vadd.f32 %v1017_v22, %v4256_v58  ;;  %v2438_v50 = vpack.c.bf16 %v1977_v27, %v1976_v44  ;;  %v2441_v3 = vpack.c.bf16 %v1979_v40, %v1978_v46  ;;  %v1983_v33 = vld [vmem:[#allocation8 + $0x48] sm:$0xff]  ;;  %v1984_v54 = vld [vmem:[#allocation8 + $0x50] sm:$0xff]  ;;  %v1985_v18 = vld [vmem:[#allocation8 + $0x58] sm:$0xff] }
 0x27a   : > { %v1804_v39 = vsel %vm1783_vm6, %v1089_v14, %v1803_v43  ;;  %v1097_v5 = vrot.slane %v1096_v29, 1  ;;  %v1104_v1 = vrot.slane %v1103_v36, 2  ;;  %v1111_v52 = vrot.slane %v1110_v24, 4  ;;  %v1981_v43 = vld [vmem:[#allocation8 + $0x38] sm:$0xff]  ;;  %v1986_v14 = vld [vmem:[#allocation8 + $0x60] sm:$0xff] }
 0x27b   : > { %v1118_v49 = vsel %vm1054_vm0, %v1051_v41, -inf  ;;  %v1117_v34 = vsel %vm1052_vm14, %v1050_v51, -inf  ;;  %v2447_v61 = vpack.c.bf16 %v1983_v33, %v1982_v38  ;;  %v2450_v30 = vpack.c.bf16 %v1985_v18, %v1984_v54  ;;  %v1989_v22 = vld [vmem:[#allocation8 + $0x78] sm:$0xff]  ;;  %v2303_v51 = vld [vmem:[%s4029_s4] ss:$0 sm:$0xff] }
 0x27c   : > { %v1098_v19 = vmax.f32 %v1096_v29, %v1097_v5  ;;  %v1105_v11 = vmax.f32 %v1103_v36, %v1104_v1  ;;  %v1112_v7 = vmax.f32 %v1110_v24, %v1111_v52  ;;  %v1119_v6 = vmax.f32 %v1117_v34, %v1118_v49  ;;  %v1987_v29 = vld [vmem:[#allocation8 + $0x68] sm:$0xff]  ;;  %v1988_v24 = vld [vmem:[#allocation8 + $0x70] sm:$0xff] }
 0x27d   : > { %v2453_v36 = vpack.c.bf16 %v1987_v29, %v1986_v14  ;;  %v2456_v47 = vpack.c.bf16 %v1989_v22, %v1988_v24  ;;  %v2821_v41 = vmov 0.0  }
 0x27e   : > { %v1805_v62 = vsel %vm1785_vm7, %v1098_v19, %v1804_v39  ;;  %v1106_v10 = vrot.slane %v1105_v11, 1  ;;  %v1113_v53 = vrot.slane %v1112_v7, 2  ;;  %v1120_v20 = vrot.slane %v1119_v6, 4 }
 0x280   : > { %v1107_v60 = vmax.f32 %v1105_v11, %v1106_v10  ;;  %v1114_v59 = vmax.f32 %v1112_v7, %v1113_v53  ;;  %v1121_v2 = vmax.f32 %v1119_v6, %v1120_v20 }
 0x282   : > { %v1806_v42 = vsel %vm1787_vm8, %v1107_v60, %v1805_v62  ;;  %v1115_v45 = vrot.slane %v1114_v59, 1  ;;  %v1122_v4 = vrot.slane %v1121_v2, 2 }
 0x284   : > { %v1116_v13 = vmax.f32 %v1114_v59, %v1115_v45  ;;  %v1123_v23 = vmax.f32 %v1121_v2, %v1122_v4 }
 0x286   : > { %v1807_v8 = vsel %vm1789_vm11, %v1116_v13, %v1806_v42  ;;  %v1124_v63 = vrot.slane %v1123_v23, 1 }
 0x288   : > { %v1125_v31 = vmax.f32 %v1123_v23, %v1124_v63 }
 0x28a   : > { %v1808_v35 = vsel %vm1791_vm12, %v1125_v31, %v1807_v8 }
 0x28b   : > { %v1846_v16 = vsel %vm874_vm1, %v4257_v32, %v1808_v35 }
 0x28c   : > { %v1860_v0 = vadd.f32 %v1853_v25, %v1846_v16 }
 0x28e   : > { %1862 = vst [vmem:[%s3931_s15] sm:$0xff] %v1860_v0 }
 0x2ba   : > { %v1826_v21 = vpop.permute.xlu0 %1825 }
 0x2e0   : > { %v1844_v26 = vpop.permute.xlu1 %1843 }
 0x2e1   : > { %v1847_v56 = vsel %vm874_vm1, %v1826_v21, %v1844_v26  ;;  %vm2820_vm1 = vmmov 0  }
 0x2e2   : > { %v1861_v55 = vadd.f32 %v3834_v48, %v1847_v56  ;;  %v2444_v48 = vpack.c.bf16 %v1981_v43, %v1980_v9 }
 0x2e4   : > { %1863 = vst [vmem:[%s3931_s15 + $0x8] sm:$0xff] %v1861_v55  ;;  %1967 = vmatprep.mubr.f32.mxu1 %v1861_v55 }
 0x2e5   : > { %1968 = vmatmul.mubr.f32.vlgmr.msra.gmra.mrb[36].mxu1 %v1860_v0 }
 0x2e6   : > { %2436 = vmatpush3.bf16.msra.mxu1 %v2435_v12  ;;  %2399 = vmatprep.mubr.msk.f32.mxu1 %vm2820_vm1, %v2821_v41 }
 0x2e7   : > { %2437 = vmatprep.subr.bf16.mxu1 %v2819_v17 }
 0x2ea   : > { %2439 = vmatpush3.bf16.msra.mxu1 %v2438_v50 }
 0x2eb   : > { %2440 = vmatprep.subr.bf16.mxu1 %v2819_v17 }
 0x2ee   : > { %2442 = vmatpush3.bf16.msra.mxu1 %v2441_v3 }
 0x2ef   : > { %2443 = vmatprep.subr.bf16.mxu1 %v2819_v17 }
 0x2f2   : > { %2445 = vmatpush3.bf16.msra.mxu1 %v2444_v48 }
 0x2f3   : > { %2446 = vmatprep.subr.bf16.mxu1 %v2819_v17 }
 0x2f6   : > { %2448 = vmatpush3.bf16.msra.mxu1 %v2447_v61 }
 0x2f7   : > { %2449 = vmatprep.subr.bf16.mxu1 %v2819_v17 }
 0x2fa   : > { %2451 = vmatpush3.bf16.msra.mxu1 %v2450_v30 }
 0x2fb   : > { %2452 = vmatprep.subr.bf16.mxu1 %v2819_v17 }
 0x2fe   : > { %2454 = vmatpush3.bf16.msra.mxu1 %v2453_v36 }
 0x2ff   : > { %2455 = vmatprep.subr.bf16.mxu1 %v2819_v17 }
 0x302   : > { %2457 = vmatpush3.bf16.msra.mxu1 %v2456_v47 }
 0x3b8   : > { %v2347_v58 = vpop.f32.mrb[36].mxu1 }
 0x3b9   : > { %v2348_v39 = vpop.f32.mrb[37].mxu1 }
 0x3ba   : > { %v2349_v5 = vadd.f32 %v2348_v39, %v2347_v58 }
 0x3bc   : > { %v1970_v1 = vadd.f32 %v2349_v5, %v2303_v51 }
 0x3be   : > { %v1973_v52 = vmax.f32 %v1970_v1, 0.0 }
 0x3c0   : > { %2400 = vmatmul.mubr.f32.vlgmr.msra.gmra.mrb[38].mxu1 %v1973_v52 }
 0x3c1   : > { %2712 = shalt.err (!%p2709_p4)
}
 0x3c2   : > { %s2713_s14 = scalar_lea.hbm %s3952_s19, 256  ;;  %s2717_s18 = scalar_lea.hbm %s4033_s8, 512 }
 0x3c3   : > { %p2714_p9 = scmp.ne.s32.totalorder %s3952_s19, %s2713_s14  ;;  %p2718_p8 = scmp.lt.u32.totalorder %s3952_s19, %s4033_s8 }
 0x3c4   : > { %p2719_p13 = scmp.lt.u32.totalorder %s2717_s18, %s2713_s14  ;;  %p2721_p10 = scmp.lt.u32.totalorder %s2713_s14, %s3952_s19 }
 0x3c5   : > { %p2715_p0 = pnand %p2714_p9, %p3011_p5 }
 0x3c6   : > { %p2720_p6 = por %p2719_p13, %p2718_p8 }
 0x3c7   : > { %p2716_p11 = pneg %p2715_p0 }
 0x3c8   : > { %p2722_p3 = por %p2721_p10, %p2720_p6 }
 0x3ca   : > { %p2723_p7 = pnand %p2722_p3, %p2716_p11 }
 0x3cc   : > { %2726 = shalt.err (!%p2723_p7)
}
 0x3cd   : > { %2477 = dma.vmem_to_hbm [thread:$0]  (%p3011_p5), %s2112_s10, 256, %s3952_s19, %s2084_s27   ;;  %v2304_v17 = vld [vmem:[%s4031_s6] ss:$0 sm:$0xff]  ;;  %v2068_v10 = vand.u32 127, %v1850_v37 }
 0x3ce   : > { %s2257_s23 = sshll.u32 %s3059_s1, 3  ;;  %s2307_s25 = sshll.u32 %s2890_s9, 7 }
 0x3cf   : > { %s372_s10 = scalar_lea.vmem [#allocation10], %s2257_s23  ;;  %vm2069_vm2 = vcmp.eq.s32.totalorder %v2068_v10, 2  ;;  %s3981_s13 = scalar_lea.hbm %s4032_s7, %s2307_s25 }
 0x3d0   : > { %s2097_s19 = sshll.u32 %s372_s10, 4  ;;  %s2079_s14 = scalar_lea.sflag [#allocation4], %s3059_s1  ;;  %s3983_s19 = int_to_ptr.vmem [resolvable:$true] %s2097_s19 }
 0x3d1   : > { %s2727_s21 = scalar_lea.vmem %s3983_s19, 128  ;;  %s2823_s9 = smov [#allocation10]  }
 0x3d2   : > { %p2728_p12 = scmp.ne.s32.totalorder %s3983_s19, %s2727_s21  ;;  %s2731_s15 = sshll.u32 %s2823_s9, 4  ;;  %s2732_s15 = int_to_ptr.vmem [resolvable:$false] %s2731_s15 }
 0x3d3   : > { %s2733_s18 = scalar_lea.vmem %s2732_s15, 256  ;;  %p2734_p4 = scmp.lt.s32.totalorder %s3983_s19, %s2732_s15 }
 0x3d4   : > { %p2729_p2 = pnand %p2728_p12, %p3011_p5  ;;  %p2735_p9 = scmp.lt.s32.totalorder %s2733_s18, %s2727_s21 }
 0x3d6   : > { %p2730_p1 = pneg %p2729_p2  ;;  %p2736_p0 = por %p2735_p9, %p2734_p4 }
 0x3d8   : > { %p2737_p11 = pnand %p2736_p0, %p2730_p1 }
 0x493   : > { %v2063_v49 = vpop.f32.mrb[38].mxu1 }
 0x494   : > { %v2064_v34 = vadd.f32 %v2304_v17, %v2063_v49  ;;  %v2401_v19 = vpop.f32.mrb[39].mxu1 }
 0x496   : > { %v2070_v11 = vsub.f32 0.0, %v2064_v34 }
 0x498   : > { %v2071_v7 = vmul.f32 1.442695, %v2070_v11 }
 0x49a   : > { %2581 = vpow2.f32 %v2071_v7 }
 0x4a4   : > { %v2582_v6 = vpop.eup %2581 }
 0x4a5   : > { %v2073_v62 = vadd.f32 1.0, %v2582_v6 }
 0x4a7   : > { %2583 = vrcp.f32 %v2073_v62 }
 0x4b1   : > { %v2584_v53 = vpop.eup %2583 }
 0x4b2   : > { %v2076_v20 = vsel %vm2069_vm2, %v2584_v53, %v2064_v34 }
 0x4b3   : > { %2077 = vst [vmem:[%s372_s10] sm:$0xff] %v2076_v20 }
 0x4b4   : > { %2740 = shalt.err (!%p2737_p11)
}
 0x4b5   : > { %s2741_s1 = scalar_lea.hbm %s3981_s13, 128  ;;  %s2745_s12 = scalar_lea.hbm %s4032_s7, 256 }
 0x4b6   : > { %p2742_p8 = scmp.ne.s32.totalorder %s3981_s13, %s2741_s1  ;;  %p2746_p10 = scmp.lt.u32.totalorder %s3981_s13, %s4032_s7 }
 0x4b7   : > { %p2747_p3 = scmp.lt.u32.totalorder %s2745_s12, %s2741_s1  ;;  %p2749_p12 = scmp.lt.u32.totalorder %s2741_s1, %s3981_s13 }
 0x4b8   : > { %p2743_p13 = pnand %p2742_p8, %p3011_p5 }
 0x4b9   : > { %p2748_p7 = por %p2747_p3, %p2746_p10 }
 0x4ba   : > { %p2744_p6 = pneg %p2743_p13 }
 0x4bb   : > { %p2750_p2 = por %p2749_p12, %p2748_p7 }
 0x4bd   : > { %p2751_p1 = pnand %p2750_p2, %p2744_p6 }
 0x4bf   : > { %2754 = shalt.err (!%p2751_p1)
}
 0x4c0   : > { %2476 = dma.vmem_to_hbm [thread:$0]  (%p3011_p5), %s3983_s19, 128, %s3981_s13, %s2079_s14  }
 0x4c1 PF: > { %s4258_s25 = sld [smem:[#allocation18_spill]]  ;;  %s4259_s10 = sld [smem:[#allocation19_spill]] }
 0x4c2   : > { %p4261_p9 = scmp.ge.s32.totalorder %s2805_s30, 2 }
 0x4c7   : > { %s2123_s27 = sand.u32 1, %s4258_s25   ;;  %p4260_p4 = scmp.ne.s32.totalorder %s4259_s10, 0 }
 0x4c8   : > { %s2124_s11 = scalar_lea.sflag [#allocation4], %s2123_s27 }
 0x4c9   : > { %p2495_p0 = pnand %p4261_p9, %p4260_p4 }
 0x4cb   : > { %2784 = dma.done.wait (!%p2495_p0), %s2124_s11, 128  }
 0x4cc   : > { %2786 = vsyncadd (!%p2495_p0), %s2124_s11, 4294967168  ;;  %s2133_s21 = scalar_lea.sflag [#allocation12], %s2123_s27 }
 0x4cd   : > { %2788 = dma.done.wait (!%p2495_p0), %s2133_s21, 256  }
 0x4ce   : > { %2790 = vsyncadd (!%p2495_p0), %s2133_s21, 4294967040  ;;  %p27_p5 = scmp.ge.s32.totalorder %s2979_s22, 4   ;;  %s4262_s27 = smov %s2797_s28 }
 0x4cf   : > { %s4263_s28 = smov %s2801_s29  ;;  %s4264_s29 = smov %s3007_s16 }
 0x4d0   : > { %s4265_s30 = smov %s2979_s22  ;;  %29 = sbr.rel (!%p27_p5) target bundleno = 11 (0xb), region = 122 }
 0x4d7   :  { %2138 = vsyncpa [#allocation3], 1 }
 0x4d8   :  { %2140 = vsyncpa [#allocation3 + $0x1], 1 }
 0x4d9   :  { %2141 = vsyncpa [#allocation6], 1 }
 0x4da   :  { %2142 = vsyncpa [#allocation9], 1 }
 0x4db   :  { %2143 = vsyncpa [#allocation4], 1 }
 0x4dc   :  { %2145 = vsyncpa [#allocation4 + $0x1], 1 }
 0x4dd   :  { %2146 = vsyncpa [#allocation12], 1 }
 0x4de   :  { %2148 = vsyncpa [#allocation12 + $0x1], 1 }

</bundles_post_ra>
